<compile_context>
chip_gen: v7x
topology: tpu7x:2x2x1
jax: 0.10.0
libtpu: 0.0.40
codegen_flags: <defaults>
</compile_context>

<pallas_src>
import math
from functools import partial

import jax
import jax.numpy as jnp
from jax import lax
from jax.experimental import pallas as pl
from jax.experimental.pallas import tpu as pltpu

HIDDEN = 32       # hyperparams.hidden_channels
DEPTH = 3         # hyperparams.depth
POOL_RATIO = 0.5  # hyperparams.pool_ratios
# dropout = 0.0 -> no-op; act = F.elu; sum_res = True
# TODO(synk): hyperparams.readout is unspecified; implemented global-mean
# readout (the non-"readout_cat" branch, so MLP in_channels == hidden).


def _elu(v):
    # ELU(alpha=1); exp(min(v, 0)) avoids overflow in the unselected lane.
    return jnp.where(v > 0, v, jnp.exp(jnp.minimum(v, 0.0)) - 1.0)


# ---------------- single fused Pallas kernel ----------------

def _gnn_fused_kernel(a_ref, x_ref, w_ref, b_ref, pool_ref, o_ref,
                      *, depth, ks, in_ch):
    f32 = jnp.float32
    a = a_ref[...]                    # (n, n) dense symmetric adjacency
    x = x_ref[...]                    # (n, in_ch)
    n = a.shape[0]

    b_all = b_ref[...]                # (2*depth+2, hidden)
    pool_all = pool_ref[...]          # (depth, hidden), rows pre-normalized

    row = lax.broadcasted_iota(jnp.int32, (n, n), 0)
    col = lax.broadcasted_iota(jnp.int32, (n, n), 1)
    is_diag = row == col              # boolean diag mask, built once
    ones_col = jnp.ones((n, 1), f32)

    def rows_of(v_col):
        # (n,1) -> (n,n) with [i, j] = v[j]; MXU outer product (idle slot),
        # avoids f32 eye masks, cross-sublane reduces and odd-shape transposes.
        return lax.dot_general(ones_col, v_col, (((1,), (1,)), ((), ())),
                               preferred_element_type=f32)

    def gcn(adj, x_in, w, b_row, m_col, act):
        # GCNConv(improved=True) without materializing A_hat / eye.
        xw = jnp.dot(x_in, w, preferred_element_type=f32)
        deg = jnp.sum(adj, axis=1, keepdims=True) + 2.0   # rowsum(A) + 2
        dinv = lax.rsqrt(deg)                             # (n, 1)
        y = dinv * jnp.dot(adj, dinv * xw, preferred_element_type=f32)
        y = y + (2.0 * dinv * dinv) * xw + b_row          # +2I term analytically
        y = y * m_col                                     # dropped rows stay 0
        return _elu(y) if act else y

    m_col = ones_col                                      # active-node mask
    x = gcn(a, x, w_ref[0][:in_ch, :], b_all[0:1, :], m_col, act=True)

    xs, adjs, masks = [x], [a], [m_col]
    for i in range(1, depth + 1):
        # augment_adj: (A + I)^2 with self loops removed == A@A + 2A, diag = 0
        a_aug = jnp.where(is_diag, 0.0,
                          jnp.dot(a, a, preferred_element_type=f32) + 2.0 * a)

        # TopKPooling score: tanh(x @ (p / ||p||)); p pre-normalized at pack time.
        p_row = pool_all[i - 1:i, :]                                  # (1, hidden)
        s = jnp.tanh(lax.dot_general(x, p_row, (((1,), (1,)), ((), ())),
                                     preferred_element_type=f32))     # (n, 1)

        # top-k among active nodes via rank counting (tanh in (-1,1) so -2 == -inf);
        # index tie-break matches lax.top_k's lowest-index behavior.
        s_sel = jnp.where(m_col > 0, s, -2.0)
        s_i = jnp.broadcast_to(s_sel, (n, n))             # [i, j] = s[i]
        s_j = rows_of(s_sel)                              # [i, j] = s[j]
        before = jnp.logical_or(s_j > s_i,
                                jnp.logical_and(s_j == s_i, col < row))
        rank = jnp.sum(before.astype(f32), axis=1, keepdims=True)     # (n, 1)
        m_col = (rank < float(ks[i - 1])).astype(f32)                 # new mask
        m_rows = rows_of(m_col)                           # [i, j] = m[j]

        x = x * s * m_col                  # == x[perm] * score[perm]
        a = a_aug * m_col * m_rows         # == a_aug[perm][:, perm]
        x = gcn(a, x, w_ref[i], b_all[i:i + 1, :], m_col, act=True)
        if i < depth:
            xs.append(x)
            adjs.append(a)
            masks.append(m_col)

    for i in range(depth):
        j = depth - 1 - i
        x = xs[j] + x                      # unpool (up[perm] = x) + sum_res
        idx = depth + 1 + i
        x = gcn(adjs[j], x, w_ref[idx], b_all[idx:idx + 1, :], masks[j],
                act=(i < depth - 1))

    # global mean readout over all N nodes (single graph) + 1-layer MLP.
    # Out weight/bias are zero-padded to `hidden` lanes; wrapper slices.
    mean = jnp.sum(x, axis=0, keepdims=True) * (1.0 / n)
    nw = 2 * depth + 1
    o_ref[...] = (jnp.dot(mean, w_ref[nw], preferred_element_type=f32)
                  + b_all[nw:nw + 1, :])


def gnn_forward(packed, x, a0, *, out_channels):
    n, in_ch = x.shape
    hidden = packed["w"].shape[1]
    depth = packed["pool"].shape[0]

    ks, cur = [], n
    for _ in range(depth):                 # static top-k sizes per level
        cur = int(math.ceil(POOL_RATIO * cur))
        ks.append(cur)

    vmem = pl.BlockSpec(memory_space=pltpu.MemorySpace.VMEM)
    out = pl.pallas_call(
        partial(_gnn_fused_kernel, depth=depth, ks=tuple(ks), in_ch=in_ch),
        out_shape=jax.ShapeDtypeStruct((1, hidden), jnp.float32),
        in_specs=[vmem] * 5,
        out_specs=vmem,
    )(a0, x, packed["w"], packed["b"], packed["pool"])
    return out[:, :out_channels]


# ---------------- parameters (deterministic init) + one-time packing ----------------

def glorot(key, shape):
    fan_in, fan_out = shape
    lim = math.sqrt(6.0 / (fan_in + fan_out))
    return jax.random.uniform(key, shape, jnp.float32, -lim, lim)


def init_params(key, in_channels, hidden, out_channels, depth):
    keys = iter(jax.random.split(key, 4 * depth + 8))
    zeros_b = lambda c: jnp.zeros((1, c), jnp.float32)
    params = {}
    down = [(glorot(next(keys), (in_channels, hidden)), zeros_b(hidden))]
    for _ in range(depth):
        down.append((glorot(next(keys), (hidden, hidden)), zeros_b(hidden)))
    params["down"] = down
    params["pool"] = [glorot(next(keys), (hidden, 1)) for _ in range(depth)]
    up = [(glorot(next(keys), (hidden, hidden)), zeros_b(hidden)) for _ in range(depth - 1)]
    up.append((glorot(next(keys), (hidden, hidden)), zeros_b(hidden)))
    params["up"] = up
    params["out"] = (glorot(next(keys), (hidden, out_channels)), zeros_b(out_channels))
    return params


def pack_params(params, in_channels, hidden, out_channels, depth):
    """Pack all per-layer params into 3 slabs (done ONCE, outside the jitted call)."""
    nw = 2 * depth + 2
    w_all = jnp.zeros((nw, hidden, hidden), jnp.float32)
    b_all = jnp.zeros((nw, hidden), jnp.float32)

    w0, b0 = params["down"][0]                       # (in_ch, hidden)
    w_all = w_all.at[0, :in_channels, :].set(w0)
    b_all = b_all.at[0, :].set(b0[0])
    for i in range(1, depth + 1):
        w, b = params["down"][i]
        w_all = w_all.at[i].set(w)
        b_all = b_all.at[i].set(b[0])
    for i in range(depth):
        w, b = params["up"][i]
        w_all = w_all.at[depth + 1 + i].set(w)
        b_all = b_all.at[depth + 1 + i].set(b[0])
    wo, bo = params["out"]                           # (hidden, out_ch)
    w_all = w_all.at[nw - 1, :, :out_channels].set(wo)
    b_all = b_all.at[nw - 1, :out_channels].set(bo[0])

    # lane-dense, pre-normalized pool rows: score = tanh(x @ (p/||p||))
    pool_rows = jnp.stack(
        [(p / jnp.sqrt(jnp.sum(p * p)))[:, 0] for p in params["pool"]], axis=0)
    return {"w": w_all, "b": b_all, "pool": pool_rows}


# ---------------- pure-JAX pooled reference (correctness check only) ----------------

def _reference_forward(params, x, a0):
    depth = DEPTH

    def gcn_ref(a, xx, w, b, act):
        nn = a.shape[0]
        a_sl = a + 2.0 * jnp.eye(nn, dtype=a.dtype)
        deg = jnp.sum(a_sl, axis=1, keepdims=True)
        a_hat = lax.rsqrt(deg) * a_sl * lax.rsqrt(deg).T
        out = a_hat @ (xx @ w) + b
        return _elu(out) if act else out

    w0, b0 = params["down"][0]
    x = gcn_ref(a0, x, w0, b0, True)
    xs, adjs, perms = [x], [a0], []
    a = a0
    for i in range(1, depth + 1):
        nn = a.shape[0]
        eye = jnp.eye(nn, dtype=a.dtype)
        b_adj = a * (1.0 - eye) + eye
        a_aug = (b_adj @ b_adj) * (1.0 - eye)
        p = params["pool"][i - 1]
        score = jnp.tanh((x @ p) / jnp.sqrt(jnp.sum(p * p)))[:, 0]
        k = int(math.ceil(POOL_RATIO * nn))
        _, perm = lax.top_k(score, k)
        x = x[perm] * score[perm][:, None]
        a = a_aug[perm][:, perm]
        w, bb = params["down"][i]
        x = gcn_ref(a, x, w, bb, True)
        if i < depth:
            xs.append(x)
            adjs.append(a)
        perms.append(perm)
    for i in range(depth):
        j = depth - 1 - i
        res, a, perm = xs[j], adjs[j], perms[j]
        up = jnp.zeros_like(res).at[perm].set(x)
        x = res + up
        w, bb = params["up"][i]
        x = gcn_ref(a, x, w, bb, i < depth - 1)
    wo, bo = params["out"]
    return jnp.mean(x, axis=0, keepdims=True) @ wo + bo


if __name__ == "__main__":
    N, IN_CH, OUT_CH = 16, 4, 3
    key = jax.random.PRNGKey(0)
    kx, kp = jax.random.split(key)

    x = jax.random.normal(kx, (N, IN_CH), jnp.float32)

    # undirected ring graph + a few chords -> symmetric dense adjacency, no self loops
    src = list(range(N)) + [0, 2, 5, 7]
    dst = [(i + 1) % N for i in range(N)] + [8, 10, 13, 15]
    a0 = jnp.zeros((N, N), jnp.float32)
    a0 = a0.at[jnp.array(src), jnp.array(dst)].set(1.0)
    a0 = jnp.maximum(a0, a0.T)

    params = init_params(kp, IN_CH, HIDDEN, OUT_CH, DEPTH)
    packed = jax.tree_util.tree_map(jnp.asarray,
                                    pack_params(params, IN_CH, HIDDEN, OUT_CH, DEPTH))

    forward = jax.jit(partial(gnn_forward, out_channels=OUT_CH))
    out = forward(packed, x, a0)
    jax.block_until_ready(out)
    assert out.shape == (1, OUT_CH)

    ref = _reference_forward(params, x, a0)
    assert jnp.allclose(out, ref, rtol=1e-3, atol=1e-3), (out, ref)
    print("KERNEL_OK")
</pallas_src>

<mosaic_0001>
module attributes {stable_mosaic.version = 11 : i64} {
  func.func @_gnn_fused_kernel(%arg0: memref<16x16xf32, #tpu.memory_space<vmem>>, %arg1: memref<16x4xf32, #tpu.memory_space<vmem>>, %arg2: memref<8x32x32xf32, #tpu.memory_space<vmem>>, %arg3: memref<8x32xf32, #tpu.memory_space<vmem>>, %arg4: memref<3x32xf32, #tpu.memory_space<vmem>>, %arg5: memref<1x32xf32, #tpu.memory_space<vmem>>) attributes {dimension_semantics = [], scalar_prefetch = 0 : i64, scratch_operands = 0 : i64, tpu.core_type = #tpu.core_type<tc>} {
    %c0 = arith.constant 0 : index
    %c0_0 = arith.constant 0 : index
    %0 = vector.load %arg0[%c0, %c0_0] : memref<16x16xf32, #tpu.memory_space<vmem>>, vector<16x16xf32>
    %c0_1 = arith.constant 0 : index
    %c0_2 = arith.constant 0 : index
    %1 = vector.load %arg1[%c0_1, %c0_2] : memref<16x4xf32, #tpu.memory_space<vmem>>, vector<16x4xf32>
    %c0_3 = arith.constant 0 : index
    %c0_4 = arith.constant 0 : index
    %2 = vector.load %arg3[%c0_3, %c0_4] : memref<8x32xf32, #tpu.memory_space<vmem>>, vector<8x32xf32>
    %c0_5 = arith.constant 0 : index
    %c0_6 = arith.constant 0 : index
    %3 = vector.load %arg4[%c0_5, %c0_6] : memref<3x32xf32, #tpu.memory_space<vmem>>, vector<3x32xf32>
    %4 = tpu.iota {dimensions = array<i32: 0>} : vector<16x16xi32>
    %5 = tpu.iota {dimensions = array<i32: 1>} : vector<16x16xi32>
    %6 = arith.cmpi eq, %4, %5 : vector<16x16xi32>
    %cst = arith.constant 1.000000e+00 : f32
    %7 = vector.broadcast %cst : f32 to vector<16x1xf32>
    %c0_7 = arith.constant 0 : index
    %c0_8 = arith.constant 0 : index
    %c0_9 = arith.constant 0 : index
    %8 = vector.load %arg2[%c0_7, %c0_8, %c0_9] : memref<8x32x32xf32, #tpu.memory_space<vmem>>, vector<1x32x32xf32>
    %9 = vector.shape_cast %8 : vector<1x32x32xf32> to vector<32x32xf32>
    %10 = vector.extract_strided_slice %9 {offsets = [0, 0], sizes = [4, 32], strides = [1, 1]} : vector<32x32xf32> to vector<4x32xf32>
    %11 = vector.extract_strided_slice %2 {offsets = [0, 0], sizes = [1, 32], strides = [1, 1]} : vector<8x32xf32> to vector<1x32xf32>
    %cst_10 = arith.constant dense<0.000000e+00> : vector<16x32xf32>
    %12 = tpu.matmul %1, %10, %cst_10 {dimension_numbers = #tpu.dot_dimension_numbers<[1], [0], [0], [1], [0, 0, 1, 1], [], []>} : vector<16x4xf32>, vector<4x32xf32>, vector<16x32xf32> -> vector<16x32xf32>
    %cst_11 = arith.constant dense<0.000000e+00> : vector<16xf32>
    %13 = vector.multi_reduction <add>, %0, %cst_11 [1] : vector<16x16xf32> to vector<16xf32>
    %14 = vector.shape_cast %13 : vector<16xf32> to vector<16x1xf32>
    %cst_12 = arith.constant 2.000000e+00 : f32
    %15 = vector.broadcast %cst_12 : f32 to vector<16x1xf32>
    %16 = arith.addf %14, %15 : vector<16x1xf32>
    %17 = math.rsqrt %16 : vector<16x1xf32>
    %18 = vector.broadcast %17 : vector<16x1xf32> to vector<16x32xf32>
    %19 = arith.mulf %18, %12 : vector<16x32xf32>
    %cst_13 = arith.constant dense<0.000000e+00> : vector<16x32xf32>
    %20 = tpu.matmul %0, %19, %cst_13 {dimension_numbers = #tpu.dot_dimension_numbers<[1], [0], [0], [1], [0, 0, 1, 1], [], []>} : vector<16x16xf32>, vector<16x32xf32>, vector<16x32xf32> -> vector<16x32xf32>
    %21 = vector.broadcast %17 : vector<16x1xf32> to vector<16x32xf32>
    %22 = arith.mulf %21, %20 : vector<16x32xf32>
    %cst_14 = arith.constant 2.000000e+00 : f32
    %23 = vector.broadcast %cst_14 : f32 to vector<16x1xf32>
    %24 = arith.mulf %23, %17 : vector<16x1xf32>
    %25 = arith.mulf %24, %17 : vector<16x1xf32>
    %26 = vector.broadcast %25 : vector<16x1xf32> to vector<16x32xf32>
    %27 = arith.mulf %26, %12 : vector<16x32xf32>
    %28 = arith.addf %22, %27 : vector<16x32xf32>
    %29 = vector.broadcast %11 : vector<1x32xf32> to vector<16x32xf32>
    %30 = arith.addf %28, %29 : vector<16x32xf32>
    %31 = vector.broadcast %7 : vector<16x1xf32> to vector<16x32xf32>
    %32 = arith.mulf %30, %31 : vector<16x32xf32>
    %cst_15 = arith.constant 0.000000e+00 : f32
    %33 = vector.broadcast %cst_15 : f32 to vector<16x32xf32>
    %34 = arith.cmpf ogt, %32, %33 : vector<16x32xf32>
    %cst_16 = arith.constant 0.000000e+00 : f32
    %35 = vector.broadcast %cst_16 : f32 to vector<16x32xf32>
    %36 = arith.minimumf %32, %35 : vector<16x32xf32>
    %37 = math.exp %36 : vector<16x32xf32>
    %cst_17 = arith.constant 1.000000e+00 : f32
    %38 = vector.broadcast %cst_17 : f32 to vector<16x32xf32>
    %39 = arith.subf %37, %38 : vector<16x32xf32>
    %40 = arith.select %34, %32, %39 : vector<16x32xi1>, vector<16x32xf32>
    %cst_18 = arith.constant dense<0.000000e+00> : vector<16x16xf32>
    %41 = tpu.matmul %0, %0, %cst_18 {dimension_numbers = #tpu.dot_dimension_numbers<[1], [0], [0], [1], [0, 0, 1, 1], [], []>} : vector<16x16xf32>, vector<16x16xf32>, vector<16x16xf32> -> vector<16x16xf32>
    %cst_19 = arith.constant 2.000000e+00 : f32
    %42 = vector.broadcast %cst_19 : f32 to vector<16x16xf32>
    %43 = arith.mulf %42, %0 : vector<16x16xf32>
    %44 = arith.addf %41, %43 : vector<16x16xf32>
    %cst_20 = arith.constant 0.000000e+00 : f32
    %45 = vector.broadcast %cst_20 : f32 to vector<16x16xf32>
    %46 = arith.select %6, %45, %44 : vector<16x16xi1>, vector<16x16xf32>
    %47 = vector.extract_strided_slice %3 {offsets = [0, 0], sizes = [1, 32], strides = [1, 1]} : vector<3x32xf32> to vector<1x32xf32>
    %cst_21 = arith.constant dense<0.000000e+00> : vector<16x1xf32>
    %48 = tpu.matmul %40, %47, %cst_21 {dimension_numbers = #tpu.dot_dimension_numbers<[1], [1], [0], [0], [0, 0, 1, 0], [], []>} : vector<16x32xf32>, vector<1x32xf32>, vector<16x1xf32> -> vector<16x1xf32>
    %49 = math.tanh %48 : vector<16x1xf32>
    %cst_22 = arith.constant 0.000000e+00 : f32
    %50 = vector.broadcast %cst_22 : f32 to vector<16x1xf32>
    %51 = arith.cmpf ogt, %7, %50 : vector<16x1xf32>
    %cst_23 = arith.constant -2.000000e+00 : f32
    %52 = vector.broadcast %cst_23 : f32 to vector<16x1xf32>
    %53 = arith.select %51, %49, %52 : vector<16x1xi1>, vector<16x1xf32>
    %54 = vector.shape_cast %53 : vector<16x1xf32> to vector<16x1xf32>
    %55 = vector.broadcast %54 : vector<16x1xf32> to vector<16x16xf32>
    %cst_24 = arith.constant dense<0.000000e+00> : vector<16x16xf32>
    %56 = tpu.matmul %7, %53, %cst_24 {dimension_numbers = #tpu.dot_dimension_numbers<[1], [1], [0], [0], [0, 0, 1, 0], [], []>} : vector<16x1xf32>, vector<16x1xf32>, vector<16x16xf32> -> vector<16x16xf32>
    %57 = arith.cmpf ogt, %56, %55 : vector<16x16xf32>
    %58 = arith.cmpf oeq, %56, %55 : vector<16x16xf32>
    %59 = arith.cmpi slt, %5, %4 : vector<16x16xi32>
    %60 = arith.andi %58, %59 : vector<16x16xi1>
    %61 = arith.ori %57, %60 : vector<16x16xi1>
    %62 = arith.extui %61 : vector<16x16xi1> to vector<16x16xi32>
    %63 = arith.sitofp %62 : vector<16x16xi32> to vector<16x16xf32>
    %cst_25 = arith.constant dense<0.000000e+00> : vector<16xf32>
    %64 = vector.multi_reduction <add>, %63, %cst_25 [1] : vector<16x16xf32> to vector<16xf32>
    %65 = vector.shape_cast %64 : vector<16xf32> to vector<16x1xf32>
    %cst_26 = arith.constant 8.000000e+00 : f32
    %66 = vector.broadcast %cst_26 : f32 to vector<16x1xf32>
    %67 = arith.cmpf olt, %65, %66 : vector<16x1xf32>
    %68 = arith.extui %67 : vector<16x1xi1> to vector<16x1xi32>
    %69 = arith.sitofp %68 : vector<16x1xi32> to vector<16x1xf32>
    %cst_27 = arith.constant dense<0.000000e+00> : vector<16x16xf32>
    %70 = tpu.matmul %7, %69, %cst_27 {dimension_numbers = #tpu.dot_dimension_numbers<[1], [1], [0], [0], [0, 0, 1, 0], [], []>} : vector<16x1xf32>, vector<16x1xf32>, vector<16x16xf32> -> vector<16x16xf32>
    %71 = vector.broadcast %49 : vector<16x1xf32> to vector<16x32xf32>
    %72 = arith.mulf %40, %71 : vector<16x32xf32>
    %73 = vector.broadcast %69 : vector<16x1xf32> to vector<16x32xf32>
    %74 = arith.mulf %72, %73 : vector<16x32xf32>
    %75 = vector.broadcast %69 : vector<16x1xf32> to vector<16x16xf32>
    %76 = arith.mulf %46, %75 : vector<16x16xf32>
    %77 = arith.mulf %76, %70 : vector<16x16xf32>
    %c1 = arith.constant 1 : index
    %c0_28 = arith.constant 0 : index
    %c0_29 = arith.constant 0 : index
    %78 = vector.load %arg2[%c1, %c0_28, %c0_29] : memref<8x32x32xf32, #tpu.memory_space<vmem>>, vector<1x32x32xf32>
    %79 = vector.shape_cast %78 : vector<1x32x32xf32> to vector<32x32xf32>
    %80 = vector.extract_strided_slice %2 {offsets = [1, 0], sizes = [1, 32], strides = [1, 1]} : vector<8x32xf32> to vector<1x32xf32>
    %cst_30 = arith.constant dense<0.000000e+00> : vector<16x32xf32>
    %81 = tpu.matmul %74, %79, %cst_30 {dimension_numbers = #tpu.dot_dimension_numbers<[1], [0], [0], [1], [0, 0, 1, 1], [], []>} : vector<16x32xf32>, vector<32x32xf32>, vector<16x32xf32> -> vector<16x32xf32>
    %cst_31 = arith.constant dense<0.000000e+00> : vector<16xf32>
    %82 = vector.multi_reduction <add>, %77, %cst_31 [1] : vector<16x16xf32> to vector<16xf32>
    %83 = vector.shape_cast %82 : vector<16xf32> to vector<16x1xf32>
    %cst_32 = arith.constant 2.000000e+00 : f32
    %84 = vector.broadcast %cst_32 : f32 to vector<16x1xf32>
    %85 = arith.addf %83, %84 : vector<16x1xf32>
    %86 = math.rsqrt %85 : vector<16x1xf32>
    %87 = vector.broadcast %86 : vector<16x1xf32> to vector<16x32xf32>
    %88 = arith.mulf %87, %81 : vector<16x32xf32>
    %cst_33 = arith.constant dense<0.000000e+00> : vector<16x32xf32>
    %89 = tpu.matmul %77, %88, %cst_33 {dimension_numbers = #tpu.dot_dimension_numbers<[1], [0], [0], [1], [0, 0, 1, 1], [], []>} : vector<16x16xf32>, vector<16x32xf32>, vector<16x32xf32> -> vector<16x32xf32>
    %90 = vector.broadcast %86 : vector<16x1xf32> to vector<16x32xf32>
    %91 = arith.mulf %90, %89 : vector<16x32xf32>
    %cst_34 = arith.constant 2.000000e+00 : f32
    %92 = vector.broadcast %cst_34 : f32 to vector<16x1xf32>
    %93 = arith.mulf %92, %86 : vector<16x1xf32>
    %94 = arith.mulf %93, %86 : vector<16x1xf32>
    %95 = vector.broadcast %94 : vector<16x1xf32> to vector<16x32xf32>
    %96 = arith.mulf %95, %81 : vector<16x32xf32>
    %97 = arith.addf %91, %96 : vector<16x32xf32>
    %98 = vector.broadcast %80 : vector<1x32xf32> to vector<16x32xf32>
    %99 = arith.addf %97, %98 : vector<16x32xf32>
    %100 = vector.broadcast %69 : vector<16x1xf32> to vector<16x32xf32>
    %101 = arith.mulf %99, %100 : vector<16x32xf32>
    %cst_35 = arith.constant 0.000000e+00 : f32
    %102 = vector.broadcast %cst_35 : f32 to vector<16x32xf32>
    %103 = arith.cmpf ogt, %101, %102 : vector<16x32xf32>
    %cst_36 = arith.constant 0.000000e+00 : f32
    %104 = vector.broadcast %cst_36 : f32 to vector<16x32xf32>
    %105 = arith.minimumf %101, %104 : vector<16x32xf32>
    %106 = math.exp %105 : vector<16x32xf32>
    %cst_37 = arith.constant 1.000000e+00 : f32
    %107 = vector.broadcast %cst_37 : f32 to vector<16x32xf32>
    %108 = arith.subf %106, %107 : vector<16x32xf32>
    %109 = arith.select %103, %101, %108 : vector<16x32xi1>, vector<16x32xf32>
    %cst_38 = arith.constant dense<0.000000e+00> : vector<16x16xf32>
    %110 = tpu.matmul %77, %77, %cst_38 {dimension_numbers = #tpu.dot_dimension_numbers<[1], [0], [0], [1], [0, 0, 1, 1], [], []>} : vector<16x16xf32>, vector<16x16xf32>, vector<16x16xf32> -> vector<16x16xf32>
    %cst_39 = arith.constant 2.000000e+00 : f32
    %111 = vector.broadcast %cst_39 : f32 to vector<16x16xf32>
    %112 = arith.mulf %111, %77 : vector<16x16xf32>
    %113 = arith.addf %110, %112 : vector<16x16xf32>
    %cst_40 = arith.constant 0.000000e+00 : f32
    %114 = vector.broadcast %cst_40 : f32 to vector<16x16xf32>
    %115 = arith.select %6, %114, %113 : vector<16x16xi1>, vector<16x16xf32>
    %116 = vector.extract_strided_slice %3 {offsets = [1, 0], sizes = [1, 32], strides = [1, 1]} : vector<3x32xf32> to vector<1x32xf32>
    %cst_41 = arith.constant dense<0.000000e+00> : vector<16x1xf32>
    %117 = tpu.matmul %109, %116, %cst_41 {dimension_numbers = #tpu.dot_dimension_numbers<[1], [1], [0], [0], [0, 0, 1, 0], [], []>} : vector<16x32xf32>, vector<1x32xf32>, vector<16x1xf32> -> vector<16x1xf32>
    %118 = math.tanh %117 : vector<16x1xf32>
    %cst_42 = arith.constant 0.000000e+00 : f32
    %119 = vector.broadcast %cst_42 : f32 to vector<16x1xf32>
    %120 = arith.cmpf ogt, %69, %119 : vector<16x1xf32>
    %cst_43 = arith.constant -2.000000e+00 : f32
    %121 = vector.broadcast %cst_43 : f32 to vector<16x1xf32>
    %122 = arith.select %120, %118, %121 : vector<16x1xi1>, vector<16x1xf32>
    %123 = vector.shape_cast %122 : vector<16x1xf32> to vector<16x1xf32>
    %124 = vector.broadcast %123 : vector<16x1xf32> to vector<16x16xf32>
    %cst_44 = arith.constant dense<0.000000e+00> : vector<16x16xf32>
    %125 = tpu.matmul %7, %122, %cst_44 {dimension_numbers = #tpu.dot_dimension_numbers<[1], [1], [0], [0], [0, 0, 1, 0], [], []>} : vector<16x1xf32>, vector<16x1xf32>, vector<16x16xf32> -> vector<16x16xf32>
    %126 = arith.cmpf ogt, %125, %124 : vector<16x16xf32>
    %127 = arith.cmpf oeq, %125, %124 : vector<16x16xf32>
    %128 = arith.cmpi slt, %5, %4 : vector<16x16xi32>
    %129 = arith.andi %127, %128 : vector<16x16xi1>
    %130 = arith.ori %126, %129 : vector<16x16xi1>
    %131 = arith.extui %130 : vector<16x16xi1> to vector<16x16xi32>
    %132 = arith.sitofp %131 : vector<16x16xi32> to vector<16x16xf32>
    %cst_45 = arith.constant dense<0.000000e+00> : vector<16xf32>
    %133 = vector.multi_reduction <add>, %132, %cst_45 [1] : vector<16x16xf32> to vector<16xf32>
    %134 = vector.shape_cast %133 : vector<16xf32> to vector<16x1xf32>
    %cst_46 = arith.constant 4.000000e+00 : f32
    %135 = vector.broadcast %cst_46 : f32 to vector<16x1xf32>
    %136 = arith.cmpf olt, %134, %135 : vector<16x1xf32>
    %137 = arith.extui %136 : vector<16x1xi1> to vector<16x1xi32>
    %138 = arith.sitofp %137 : vector<16x1xi32> to vector<16x1xf32>
    %cst_47 = arith.constant dense<0.000000e+00> : vector<16x16xf32>
    %139 = tpu.matmul %7, %138, %cst_47 {dimension_numbers = #tpu.dot_dimension_numbers<[1], [1], [0], [0], [0, 0, 1, 0], [], []>} : vector<16x1xf32>, vector<16x1xf32>, vector<16x16xf32> -> vector<16x16xf32>
    %140 = vector.broadcast %118 : vector<16x1xf32> to vector<16x32xf32>
    %141 = arith.mulf %109, %140 : vector<16x32xf32>
    %142 = vector.broadcast %138 : vector<16x1xf32> to vector<16x32xf32>
    %143 = arith.mulf %141, %142 : vector<16x32xf32>
    %144 = vector.broadcast %138 : vector<16x1xf32> to vector<16x16xf32>
    %145 = arith.mulf %115, %144 : vector<16x16xf32>
    %146 = arith.mulf %145, %139 : vector<16x16xf32>
    %c2 = arith.constant 2 : index
    %c0_48 = arith.constant 0 : index
    %c0_49 = arith.constant 0 : index
    %147 = vector.load %arg2[%c2, %c0_48, %c0_49] : memref<8x32x32xf32, #tpu.memory_space<vmem>>, vector<1x32x32xf32>
    %148 = vector.shape_cast %147 : vector<1x32x32xf32> to vector<32x32xf32>
    %149 = vector.extract_strided_slice %2 {offsets = [2, 0], sizes = [1, 32], strides = [1, 1]} : vector<8x32xf32> to vector<1x32xf32>
    %cst_50 = arith.constant dense<0.000000e+00> : vector<16x32xf32>
    %150 = tpu.matmul %143, %148, %cst_50 {dimension_numbers = #tpu.dot_dimension_numbers<[1], [0], [0], [1], [0, 0, 1, 1], [], []>} : vector<16x32xf32>, vector<32x32xf32>, vector<16x32xf32> -> vector<16x32xf32>
    %cst_51 = arith.constant dense<0.000000e+00> : vector<16xf32>
    %151 = vector.multi_reduction <add>, %146, %cst_51 [1] : vector<16x16xf32> to vector<16xf32>
    %152 = vector.shape_cast %151 : vector<16xf32> to vector<16x1xf32>
    %cst_52 = arith.constant 2.000000e+00 : f32
    %153 = vector.broadcast %cst_52 : f32 to vector<16x1xf32>
    %154 = arith.addf %152, %153 : vector<16x1xf32>
    %155 = math.rsqrt %154 : vector<16x1xf32>
    %156 = vector.broadcast %155 : vector<16x1xf32> to vector<16x32xf32>
    %157 = arith.mulf %156, %150 : vector<16x32xf32>
    %cst_53 = arith.constant dense<0.000000e+00> : vector<16x32xf32>
    %158 = tpu.matmul %146, %157, %cst_53 {dimension_numbers = #tpu.dot_dimension_numbers<[1], [0], [0], [1], [0, 0, 1, 1], [], []>} : vector<16x16xf32>, vector<16x32xf32>, vector<16x32xf32> -> vector<16x32xf32>
    %159 = vector.broadcast %155 : vector<16x1xf32> to vector<16x32xf32>
    %160 = arith.mulf %159, %158 : vector<16x32xf32>
    %cst_54 = arith.constant 2.000000e+00 : f32
    %161 = vector.broadcast %cst_54 : f32 to vector<16x1xf32>
    %162 = arith.mulf %161, %155 : vector<16x1xf32>
    %163 = arith.mulf %162, %155 : vector<16x1xf32>
    %164 = vector.broadcast %163 : vector<16x1xf32> to vector<16x32xf32>
    %165 = arith.mulf %164, %150 : vector<16x32xf32>
    %166 = arith.addf %160, %165 : vector<16x32xf32>
    %167 = vector.broadcast %149 : vector<1x32xf32> to vector<16x32xf32>
    %168 = arith.addf %166, %167 : vector<16x32xf32>
    %169 = vector.broadcast %138 : vector<16x1xf32> to vector<16x32xf32>
    %170 = arith.mulf %168, %169 : vector<16x32xf32>
    %cst_55 = arith.constant 0.000000e+00 : f32
    %171 = vector.broadcast %cst_55 : f32 to vector<16x32xf32>
    %172 = arith.cmpf ogt, %170, %171 : vector<16x32xf32>
    %cst_56 = arith.constant 0.000000e+00 : f32
    %173 = vector.broadcast %cst_56 : f32 to vector<16x32xf32>
    %174 = arith.minimumf %170, %173 : vector<16x32xf32>
    %175 = math.exp %174 : vector<16x32xf32>
    %cst_57 = arith.constant 1.000000e+00 : f32
    %176 = vector.broadcast %cst_57 : f32 to vector<16x32xf32>
    %177 = arith.subf %175, %176 : vector<16x32xf32>
    %178 = arith.select %172, %170, %177 : vector<16x32xi1>, vector<16x32xf32>
    %cst_58 = arith.constant dense<0.000000e+00> : vector<16x16xf32>
    %179 = tpu.matmul %146, %146, %cst_58 {dimension_numbers = #tpu.dot_dimension_numbers<[1], [0], [0], [1], [0, 0, 1, 1], [], []>} : vector<16x16xf32>, vector<16x16xf32>, vector<16x16xf32> -> vector<16x16xf32>
    %cst_59 = arith.constant 2.000000e+00 : f32
    %180 = vector.broadcast %cst_59 : f32 to vector<16x16xf32>
    %181 = arith.mulf %180, %146 : vector<16x16xf32>
    %182 = arith.addf %179, %181 : vector<16x16xf32>
    %cst_60 = arith.constant 0.000000e+00 : f32
    %183 = vector.broadcast %cst_60 : f32 to vector<16x16xf32>
    %184 = arith.select %6, %183, %182 : vector<16x16xi1>, vector<16x16xf32>
    %185 = vector.extract_strided_slice %3 {offsets = [2, 0], sizes = [1, 32], strides = [1, 1]} : vector<3x32xf32> to vector<1x32xf32>
    %cst_61 = arith.constant dense<0.000000e+00> : vector<16x1xf32>
    %186 = tpu.matmul %178, %185, %cst_61 {dimension_numbers = #tpu.dot_dimension_numbers<[1], [1], [0], [0], [0, 0, 1, 0], [], []>} : vector<16x32xf32>, vector<1x32xf32>, vector<16x1xf32> -> vector<16x1xf32>
    %187 = math.tanh %186 : vector<16x1xf32>
    %cst_62 = arith.constant 0.000000e+00 : f32
    %188 = vector.broadcast %cst_62 : f32 to vector<16x1xf32>
    %189 = arith.cmpf ogt, %138, %188 : vector<16x1xf32>
    %cst_63 = arith.constant -2.000000e+00 : f32
    %190 = vector.broadcast %cst_63 : f32 to vector<16x1xf32>
    %191 = arith.select %189, %187, %190 : vector<16x1xi1>, vector<16x1xf32>
    %192 = vector.shape_cast %191 : vector<16x1xf32> to vector<16x1xf32>
    %193 = vector.broadcast %192 : vector<16x1xf32> to vector<16x16xf32>
    %cst_64 = arith.constant dense<0.000000e+00> : vector<16x16xf32>
    %194 = tpu.matmul %7, %191, %cst_64 {dimension_numbers = #tpu.dot_dimension_numbers<[1], [1], [0], [0], [0, 0, 1, 0], [], []>} : vector<16x1xf32>, vector<16x1xf32>, vector<16x16xf32> -> vector<16x16xf32>
    %195 = arith.cmpf ogt, %194, %193 : vector<16x16xf32>
    %196 = arith.cmpf oeq, %194, %193 : vector<16x16xf32>
    %197 = arith.cmpi slt, %5, %4 : vector<16x16xi32>
    %198 = arith.andi %196, %197 : vector<16x16xi1>
    %199 = arith.ori %195, %198 : vector<16x16xi1>
    %200 = arith.extui %199 : vector<16x16xi1> to vector<16x16xi32>
    %201 = arith.sitofp %200 : vector<16x16xi32> to vector<16x16xf32>
    %cst_65 = arith.constant dense<0.000000e+00> : vector<16xf32>
    %202 = vector.multi_reduction <add>, %201, %cst_65 [1] : vector<16x16xf32> to vector<16xf32>
    %203 = vector.shape_cast %202 : vector<16xf32> to vector<16x1xf32>
    %cst_66 = arith.constant 2.000000e+00 : f32
    %204 = vector.broadcast %cst_66 : f32 to vector<16x1xf32>
    %205 = arith.cmpf olt, %203, %204 : vector<16x1xf32>
    %206 = arith.extui %205 : vector<16x1xi1> to vector<16x1xi32>
    %207 = arith.sitofp %206 : vector<16x1xi32> to vector<16x1xf32>
    %cst_67 = arith.constant dense<0.000000e+00> : vector<16x16xf32>
    %208 = tpu.matmul %7, %207, %cst_67 {dimension_numbers = #tpu.dot_dimension_numbers<[1], [1], [0], [0], [0, 0, 1, 0], [], []>} : vector<16x1xf32>, vector<16x1xf32>, vector<16x16xf32> -> vector<16x16xf32>
    %209 = vector.broadcast %187 : vector<16x1xf32> to vector<16x32xf32>
    %210 = arith.mulf %178, %209 : vector<16x32xf32>
    %211 = vector.broadcast %207 : vector<16x1xf32> to vector<16x32xf32>
    %212 = arith.mulf %210, %211 : vector<16x32xf32>
    %213 = vector.broadcast %207 : vector<16x1xf32> to vector<16x16xf32>
    %214 = arith.mulf %184, %213 : vector<16x16xf32>
    %215 = arith.mulf %214, %208 : vector<16x16xf32>
    %c3 = arith.constant 3 : index
    %c0_68 = arith.constant 0 : index
    %c0_69 = arith.constant 0 : index
    %216 = vector.load %arg2[%c3, %c0_68, %c0_69] : memref<8x32x32xf32, #tpu.memory_space<vmem>>, vector<1x32x32xf32>
    %217 = vector.shape_cast %216 : vector<1x32x32xf32> to vector<32x32xf32>
    %218 = vector.extract_strided_slice %2 {offsets = [3, 0], sizes = [1, 32], strides = [1, 1]} : vector<8x32xf32> to vector<1x32xf32>
    %cst_70 = arith.constant dense<0.000000e+00> : vector<16x32xf32>
    %219 = tpu.matmul %212, %217, %cst_70 {dimension_numbers = #tpu.dot_dimension_numbers<[1], [0], [0], [1], [0, 0, 1, 1], [], []>} : vector<16x32xf32>, vector<32x32xf32>, vector<16x32xf32> -> vector<16x32xf32>
    %cst_71 = arith.constant dense<0.000000e+00> : vector<16xf32>
    %220 = vector.multi_reduction <add>, %215, %cst_71 [1] : vector<16x16xf32> to vector<16xf32>
    %221 = vector.shape_cast %220 : vector<16xf32> to vector<16x1xf32>
    %cst_72 = arith.constant 2.000000e+00 : f32
    %222 = vector.broadcast %cst_72 : f32 to vector<16x1xf32>
    %223 = arith.addf %221, %222 : vector<16x1xf32>
    %224 = math.rsqrt %223 : vector<16x1xf32>
    %225 = vector.broadcast %224 : vector<16x1xf32> to vector<16x32xf32>
    %226 = arith.mulf %225, %219 : vector<16x32xf32>
    %cst_73 = arith.constant dense<0.000000e+00> : vector<16x32xf32>
    %227 = tpu.matmul %215, %226, %cst_73 {dimension_numbers = #tpu.dot_dimension_numbers<[1], [0], [0], [1], [0, 0, 1, 1], [], []>} : vector<16x16xf32>, vector<16x32xf32>, vector<16x32xf32> -> vector<16x32xf32>
    %228 = vector.broadcast %224 : vector<16x1xf32> to vector<16x32xf32>
    %229 = arith.mulf %228, %227 : vector<16x32xf32>
    %cst_74 = arith.constant 2.000000e+00 : f32
    %230 = vector.broadcast %cst_74 : f32 to vector<16x1xf32>
    %231 = arith.mulf %230, %224 : vector<16x1xf32>
    %232 = arith.mulf %231, %224 : vector<16x1xf32>
    %233 = vector.broadcast %232 : vector<16x1xf32> to vector<16x32xf32>
    %234 = arith.mulf %233, %219 : vector<16x32xf32>
    %235 = arith.addf %229, %234 : vector<16x32xf32>
    %236 = vector.broadcast %218 : vector<1x32xf32> to vector<16x32xf32>
    %237 = arith.addf %235, %236 : vector<16x32xf32>
    %238 = vector.broadcast %207 : vector<16x1xf32> to vector<16x32xf32>
    %239 = arith.mulf %237, %238 : vector<16x32xf32>
    %cst_75 = arith.constant 0.000000e+00 : f32
    %240 = vector.broadcast %cst_75 : f32 to vector<16x32xf32>
    %241 = arith.cmpf ogt, %239, %240 : vector<16x32xf32>
    %cst_76 = arith.constant 0.000000e+00 : f32
    %242 = vector.broadcast %cst_76 : f32 to vector<16x32xf32>
    %243 = arith.minimumf %239, %242 : vector<16x32xf32>
    %244 = math.exp %243 : vector<16x32xf32>
    %cst_77 = arith.constant 1.000000e+00 : f32
    %245 = vector.broadcast %cst_77 : f32 to vector<16x32xf32>
    %246 = arith.subf %244, %245 : vector<16x32xf32>
    %247 = arith.select %241, %239, %246 : vector<16x32xi1>, vector<16x32xf32>
    %248 = arith.addf %178, %247 : vector<16x32xf32>
    %c4 = arith.constant 4 : index
    %c0_78 = arith.constant 0 : index
    %c0_79 = arith.constant 0 : index
    %249 = vector.load %arg2[%c4, %c0_78, %c0_79] : memref<8x32x32xf32, #tpu.memory_space<vmem>>, vector<1x32x32xf32>
    %250 = vector.shape_cast %249 : vector<1x32x32xf32> to vector<32x32xf32>
    %251 = vector.extract_strided_slice %2 {offsets = [4, 0], sizes = [1, 32], strides = [1, 1]} : vector<8x32xf32> to vector<1x32xf32>
    %cst_80 = arith.constant dense<0.000000e+00> : vector<16x32xf32>
    %252 = tpu.matmul %248, %250, %cst_80 {dimension_numbers = #tpu.dot_dimension_numbers<[1], [0], [0], [1], [0, 0, 1, 1], [], []>} : vector<16x32xf32>, vector<32x32xf32>, vector<16x32xf32> -> vector<16x32xf32>
    %cst_81 = arith.constant dense<0.000000e+00> : vector<16xf32>
    %253 = vector.multi_reduction <add>, %146, %cst_81 [1] : vector<16x16xf32> to vector<16xf32>
    %254 = vector.shape_cast %253 : vector<16xf32> to vector<16x1xf32>
    %cst_82 = arith.constant 2.000000e+00 : f32
    %255 = vector.broadcast %cst_82 : f32 to vector<16x1xf32>
    %256 = arith.addf %254, %255 : vector<16x1xf32>
    %257 = math.rsqrt %256 : vector<16x1xf32>
    %258 = vector.broadcast %257 : vector<16x1xf32> to vector<16x32xf32>
    %259 = arith.mulf %258, %252 : vector<16x32xf32>
    %cst_83 = arith.constant dense<0.000000e+00> : vector<16x32xf32>
    %260 = tpu.matmul %146, %259, %cst_83 {dimension_numbers = #tpu.dot_dimension_numbers<[1], [0], [0], [1], [0, 0, 1, 1], [], []>} : vector<16x16xf32>, vector<16x32xf32>, vector<16x32xf32> -> vector<16x32xf32>
    %261 = vector.broadcast %257 : vector<16x1xf32> to vector<16x32xf32>
    %262 = arith.mulf %261, %260 : vector<16x32xf32>
    %cst_84 = arith.constant 2.000000e+00 : f32
    %263 = vector.broadcast %cst_84 : f32 to vector<16x1xf32>
    %264 = arith.mulf %263, %257 : vector<16x1xf32>
    %265 = arith.mulf %264, %257 : vector<16x1xf32>
    %266 = vector.broadcast %265 : vector<16x1xf32> to vector<16x32xf32>
    %267 = arith.mulf %266, %252 : vector<16x32xf32>
    %268 = arith.addf %262, %267 : vector<16x32xf32>
    %269 = vector.broadcast %251 : vector<1x32xf32> to vector<16x32xf32>
    %270 = arith.addf %268, %269 : vector<16x32xf32>
    %271 = vector.broadcast %138 : vector<16x1xf32> to vector<16x32xf32>
    %272 = arith.mulf %270, %271 : vector<16x32xf32>
    %cst_85 = arith.constant 0.000000e+00 : f32
    %273 = vector.broadcast %cst_85 : f32 to vector<16x32xf32>
    %274 = arith.cmpf ogt, %272, %273 : vector<16x32xf32>
    %cst_86 = arith.constant 0.000000e+00 : f32
    %275 = vector.broadcast %cst_86 : f32 to vector<16x32xf32>
    %276 = arith.minimumf %272, %275 : vector<16x32xf32>
    %277 = math.exp %276 : vector<16x32xf32>
    %cst_87 = arith.constant 1.000000e+00 : f32
    %278 = vector.broadcast %cst_87 : f32 to vector<16x32xf32>
    %279 = arith.subf %277, %278 : vector<16x32xf32>
    %280 = arith.select %274, %272, %279 : vector<16x32xi1>, vector<16x32xf32>
    %281 = arith.addf %109, %280 : vector<16x32xf32>
    %c5 = arith.constant 5 : index
    %c0_88 = arith.constant 0 : index
    %c0_89 = arith.constant 0 : index
    %282 = vector.load %arg2[%c5, %c0_88, %c0_89] : memref<8x32x32xf32, #tpu.memory_space<vmem>>, vector<1x32x32xf32>
    %283 = vector.shape_cast %282 : vector<1x32x32xf32> to vector<32x32xf32>
    %284 = vector.extract_strided_slice %2 {offsets = [5, 0], sizes = [1, 32], strides = [1, 1]} : vector<8x32xf32> to vector<1x32xf32>
    %cst_90 = arith.constant dense<0.000000e+00> : vector<16x32xf32>
    %285 = tpu.matmul %281, %283, %cst_90 {dimension_numbers = #tpu.dot_dimension_numbers<[1], [0], [0], [1], [0, 0, 1, 1], [], []>} : vector<16x32xf32>, vector<32x32xf32>, vector<16x32xf32> -> vector<16x32xf32>
    %cst_91 = arith.constant dense<0.000000e+00> : vector<16xf32>
    %286 = vector.multi_reduction <add>, %77, %cst_91 [1] : vector<16x16xf32> to vector<16xf32>
    %287 = vector.shape_cast %286 : vector<16xf32> to vector<16x1xf32>
    %cst_92 = arith.constant 2.000000e+00 : f32
    %288 = vector.broadcast %cst_92 : f32 to vector<16x1xf32>
    %289 = arith.addf %287, %288 : vector<16x1xf32>
    %290 = math.rsqrt %289 : vector<16x1xf32>
    %291 = vector.broadcast %290 : vector<16x1xf32> to vector<16x32xf32>
    %292 = arith.mulf %291, %285 : vector<16x32xf32>
    %cst_93 = arith.constant dense<0.000000e+00> : vector<16x32xf32>
    %293 = tpu.matmul %77, %292, %cst_93 {dimension_numbers = #tpu.dot_dimension_numbers<[1], [0], [0], [1], [0, 0, 1, 1], [], []>} : vector<16x16xf32>, vector<16x32xf32>, vector<16x32xf32> -> vector<16x32xf32>
    %294 = vector.broadcast %290 : vector<16x1xf32> to vector<16x32xf32>
    %295 = arith.mulf %294, %293 : vector<16x32xf32>
    %cst_94 = arith.constant 2.000000e+00 : f32
    %296 = vector.broadcast %cst_94 : f32 to vector<16x1xf32>
    %297 = arith.mulf %296, %290 : vector<16x1xf32>
    %298 = arith.mulf %297, %290 : vector<16x1xf32>
    %299 = vector.broadcast %298 : vector<16x1xf32> to vector<16x32xf32>
    %300 = arith.mulf %299, %285 : vector<16x32xf32>
    %301 = arith.addf %295, %300 : vector<16x32xf32>
    %302 = vector.broadcast %284 : vector<1x32xf32> to vector<16x32xf32>
    %303 = arith.addf %301, %302 : vector<16x32xf32>
    %304 = vector.broadcast %69 : vector<16x1xf32> to vector<16x32xf32>
    %305 = arith.mulf %303, %304 : vector<16x32xf32>
    %cst_95 = arith.constant 0.000000e+00 : f32
    %306 = vector.broadcast %cst_95 : f32 to vector<16x32xf32>
    %307 = arith.cmpf ogt, %305, %306 : vector<16x32xf32>
    %cst_96 = arith.constant 0.000000e+00 : f32
    %308 = vector.broadcast %cst_96 : f32 to vector<16x32xf32>
    %309 = arith.minimumf %305, %308 : vector<16x32xf32>
    %310 = math.exp %309 : vector<16x32xf32>
    %cst_97 = arith.constant 1.000000e+00 : f32
    %311 = vector.broadcast %cst_97 : f32 to vector<16x32xf32>
    %312 = arith.subf %310, %311 : vector<16x32xf32>
    %313 = arith.select %307, %305, %312 : vector<16x32xi1>, vector<16x32xf32>
    %314 = arith.addf %40, %313 : vector<16x32xf32>
    %c6 = arith.constant 6 : index
    %c0_98 = arith.constant 0 : index
    %c0_99 = arith.constant 0 : index
    %315 = vector.load %arg2[%c6, %c0_98, %c0_99] : memref<8x32x32xf32, #tpu.memory_space<vmem>>, vector<1x32x32xf32>
    %316 = vector.shape_cast %315 : vector<1x32x32xf32> to vector<32x32xf32>
    %317 = vector.extract_strided_slice %2 {offsets = [6, 0], sizes = [1, 32], strides = [1, 1]} : vector<8x32xf32> to vector<1x32xf32>
    %cst_100 = arith.constant dense<0.000000e+00> : vector<16x32xf32>
    %318 = tpu.matmul %314, %316, %cst_100 {dimension_numbers = #tpu.dot_dimension_numbers<[1], [0], [0], [1], [0, 0, 1, 1], [], []>} : vector<16x32xf32>, vector<32x32xf32>, vector<16x32xf32> -> vector<16x32xf32>
    %cst_101 = arith.constant dense<0.000000e+00> : vector<16xf32>
    %319 = vector.multi_reduction <add>, %0, %cst_101 [1] : vector<16x16xf32> to vector<16xf32>
    %320 = vector.shape_cast %319 : vector<16xf32> to vector<16x1xf32>
    %cst_102 = arith.constant 2.000000e+00 : f32
    %321 = vector.broadcast %cst_102 : f32 to vector<16x1xf32>
    %322 = arith.addf %320, %321 : vector<16x1xf32>
    %323 = math.rsqrt %322 : vector<16x1xf32>
    %324 = vector.broadcast %323 : vector<16x1xf32> to vector<16x32xf32>
    %325 = arith.mulf %324, %318 : vector<16x32xf32>
    %cst_103 = arith.constant dense<0.000000e+00> : vector<16x32xf32>
    %326 = tpu.matmul %0, %325, %cst_103 {dimension_numbers = #tpu.dot_dimension_numbers<[1], [0], [0], [1], [0, 0, 1, 1], [], []>} : vector<16x16xf32>, vector<16x32xf32>, vector<16x32xf32> -> vector<16x32xf32>
    %327 = vector.broadcast %323 : vector<16x1xf32> to vector<16x32xf32>
    %328 = arith.mulf %327, %326 : vector<16x32xf32>
    %cst_104 = arith.constant 2.000000e+00 : f32
    %329 = vector.broadcast %cst_104 : f32 to vector<16x1xf32>
    %330 = arith.mulf %329, %323 : vector<16x1xf32>
    %331 = arith.mulf %330, %323 : vector<16x1xf32>
    %332 = vector.broadcast %331 : vector<16x1xf32> to vector<16x32xf32>
    %333 = arith.mulf %332, %318 : vector<16x32xf32>
    %334 = arith.addf %328, %333 : vector<16x32xf32>
    %335 = vector.broadcast %317 : vector<1x32xf32> to vector<16x32xf32>
    %336 = arith.addf %334, %335 : vector<16x32xf32>
    %337 = vector.broadcast %7 : vector<16x1xf32> to vector<16x32xf32>
    %338 = arith.mulf %336, %337 : vector<16x32xf32>
    %cst_105 = arith.constant dense<0.000000e+00> : vector<32xf32>
    %339 = vector.multi_reduction <add>, %338, %cst_105 [0] : vector<16x32xf32> to vector<32xf32>
    %340 = vector.shape_cast %339 : vector<32xf32> to vector<1x32xf32>
    %cst_106 = arith.constant 6.250000e-02 : f32
    %341 = vector.broadcast %cst_106 : f32 to vector<1x32xf32>
    %342 = arith.mulf %340, %341 : vector<1x32xf32>
    %c7 = arith.constant 7 : index
    %c0_107 = arith.constant 0 : index
    %c0_108 = arith.constant 0 : index
    %343 = vector.load %arg2[%c7, %c0_107, %c0_108] : memref<8x32x32xf32, #tpu.memory_space<vmem>>, vector<1x32x32xf32>
    %344 = vector.shape_cast %343 : vector<1x32x32xf32> to vector<32x32xf32>
    %cst_109 = arith.constant dense<0.000000e+00> : vector<1x32xf32>
    %345 = tpu.matmul %342, %344, %cst_109 {dimension_numbers = #tpu.dot_dimension_numbers<[1], [0], [0], [1], [0, 0, 1, 1], [], []>} : vector<1x32xf32>, vector<32x32xf32>, vector<1x32xf32> -> vector<1x32xf32>
    %346 = vector.extract_strided_slice %2 {offsets = [7, 0], sizes = [1, 32], strides = [1, 1]} : vector<8x32xf32> to vector<1x32xf32>
    %347 = arith.addf %345, %346 : vector<1x32xf32>
    %c0_110 = arith.constant 0 : index
    %c0_111 = arith.constant 0 : index
    %348 = vector.load %arg5[%c0_110, %c0_111] : memref<1x32xf32, #tpu.memory_space<vmem>>, vector<1x32xf32>
    tpu.vector_store %arg5[%c0_110, %c0_111], %347 {strides = array<i32>} : memref<1x32xf32, #tpu.memory_space<vmem>>, vector<1x32xf32>,
    return
  }
}

</mosaic_0001>

<bundles_post_ra>
// kernel: gnn_forward.1
= control target key start
LH: loop header
LB: loop body
LE: loop exit
PB: predicated region body
PF: predicated region fallthrough
CT: control target
= control target key end

     0   :  { %10 = vsyncpa [#allocation3], 0  ;;  %s3547_s0 = inlined_call_operand.vmem [shape: f32[16,16], index: 0, kind: input, shape index: {}]   ;;  %s3548_s1 = inlined_call_operand.vmem [shape: f32[16,4], index: 1, kind: input, shape index: {}]   ;;  %s3549_s2 = inlined_call_operand.hbm [shape: f32[8,32,32], index: 2, kind: input, shape index: {}]   ;;  %s3550_s3 = inlined_call_operand.vmem [shape: f32[8,32], index: 3, kind: input, shape index: {}]   ;;  %s3551_s4 = inlined_call_operand.vmem [shape: f32[3,32], index: 4, kind: input, shape index: {}]   ;;  %s3552_s5 = inlined_call_operand.hbm [shape: f32[1,32], index: 5, kind: output, shape index: {}]  }
   0x1   :  { %11 = vsyncpa [#allocation4], 0  ;;  %s3057_s18 = smov [#allocation2]   ;;  %s3009_s22 = scalar_lea.hbm %s3549_s2, 4096 }
   0x2   :  { %s21_s19 = sshll.u32 %s3057_s18, 4  ;;  %p3010_p0 = scmp.ne.s32.totalorder %s3549_s2, %s3009_s22  ;;  %s22_s19 = int_to_ptr.vmem [resolvable:$true] %s21_s19 }
   0x3   :  { %p3013_p1 = scmp.lt.u32.totalorder %s3009_s22, %s3549_s2 }
   0x5   :  { %p3015_p2 = pnand %p3013_p1, %p3010_p0 }
   0x7   :  { %3018 = shalt.err (!%p3015_p2)
}
   0x8   :  { %s3019_s27 = scalar_lea.vmem %s22_s19, 4096  ;;  %p3024_p4 = scmp.lt.s32.totalorder %s22_s19, %s22_s19 }
   0x9   :  { %p3020_p3 = scmp.ne.s32.totalorder %s22_s19, %s3019_s27  ;;  %p3025_p5 = scmp.lt.s32.totalorder %s3019_s27, %s3019_s27 }
   0xb   :  { %p3026_p6 = por %p3025_p5, %p3024_p4 }
   0xd   :  { %p3027_p7 = pnand %p3026_p6, %p3020_p3 }
   0xf   :  { %3030 = shalt.err (!%p3027_p7)
}
  0x10   :  { %s3058_s28 = smov 128   ;;  %s3059_s29 = smov 8  }
  0x11   :  { %27 = dma.hbm_to_vmem [thread:$0]  %s3549_s2, 4096, %s22_s19, [#allocation3], %s3058_s28, %s3058_s28, %s3059_s29  }
  0x12   :  { %3053 = dma.done.wait [#allocation3], 4096  }
  0x13   :  { %3054 = vsyncadd [#allocation3], 4294963200  ;;  %vm56_vm0 = vcmask 1043456   ;;  %vm49_vm1 = vcmask 31744   ;;  %vm135_vm2 = vcmask 130048   ;;  %v48_v0 = vld [vmem:[#allocation2] sm:$0xff]  ;;  %v41_v18 = vlaneseq }
  0x14   :  { %v37_v1 = vld [vmem:[%s3548_s1] sm:$0xff]  ;;  %v38_v2 = vld [vmem:[%s3548_s1 + $0x8] sm:$0xff]  ;;  %2622 = vmatprep.subr.msk.mxu0 %vm56_vm0, %v48_v0  ;;  %vm342_vm5 = vcmask 261120   ;;  %vm354_vm6 = vcmask 7168   ;;  %v3060_v53 = vmov 1.0  }
  0x15   :  { %2624 = vmatprep.mubr.msk.f32.mxu0 %vm49_vm1, %v37_v1  ;;  %v3116_v3 = vld [vmem:[%s3547_s0] sm:$0xff]  ;;  %v3121_v4 = vld [vmem:[%s3547_s0 + $0x8] sm:$0xff]  ;;  %2623 = vmatpush3.msk.msra.mxu0 %vm56_vm0, %v48_v0  ;;  %v3140_v20 = vshrl.u32 %v41_v18, 7  ;;  %vm3184_vm7 = vmpackc.low %vm354_vm6, %vm354_vm6  ;;  %v3197_v62 = vand.u32 127, %v41_v18 }
  0x16   :  { %v136_v5 = vsel %vm135_vm2, %v3116_v3, 0.0  ;;  %2625 = vmatmul.mubr.msk.f32.vlgmr.msra.gmra.mrb[0].mxu0 %vm49_vm1, %v38_v2  ;;  %v139_v6 = vsel %vm135_vm2, %v3121_v4, 0.0  ;;  %v3150_v24 = vld [vmem:[%s3550_s3] sm:$0xff]  ;;  %2645 = vmatprep.mubr.msk.f32.mxu1 %vm354_vm6, %v3060_v53  ;;  %v2820_v54 = vpack.c.bf16 %v3121_v4, %v3116_v3  ;;  %v556_v1 = vld [vmem:[#allocation2 + $0x28] sm:$0xff] }
  0x17   :  { %137 = vadd.xlane.f32.xlu0 %v136_v5  ;;  %2631 = vmatprep.mubr.msk.f32.mxu0 %vm135_vm2, %v3116_v3  ;;  %v241_v23 = vsub.s32 0, %v3140_v20  ;;  %v3163_v41 = vld [vmem:[%s3551_s4] sm:$0x7]  ;;  %v3195_v61 = vadd.s32 8, %v3140_v20  ;;  %vm443_vm10 = vcmp.lt.s32.totalorder %v3197_v62, %v3140_v20 }
  0x18   :  { %v555_v0 = vld [vmem:[#allocation2 + $0x20] sm:$0xff] }
  0x19   :  { %v242_v29 = vrot.slane %v3150_v24, %v241_v23  ;;  %v339_v44 = vrot.slane %v3163_v41, %v241_v23  ;;  %vm47_vm8 = vcmp.eq.s32.totalorder %v3195_v61, %v3197_v62  ;;  %v2836_v2 = vpack.c.bf16 %v556_v1, %v555_v0 }
  0x1a   :  { %vm444_vm9 = vcmp.lt.s32.totalorder %v3197_v62, %v3195_v61  ;;  %v745_v1 = vsub.s32 1, %v3140_v20 }
  0x1b   :  { %140 = vadd.xlane.f32.xlu0 %v139_v6 }
  0xa4   :  { %v138_v7 = vpop.xlane.xlu0 %137 }
  0xa5   :  { %v142_v10 = vadd.f32 2.0, %v138_v7 }
  0xa8   :  { %v141_v8 = vpop.xlane.xlu0 %140 }
  0xa9   :  { %v143_v9 = vadd.f32 2.0, %v141_v8  ;;  %v3061_v8 = vmov 0.0  }
  0xab   :  { %2954 = vrsqrt.f32 %v143_v9 }
  0xac   :  { %2956 = vrsqrt.f32 %v142_v10 }
  0xb5   :  { %v3129_v11 = vpop.eup %2954 }
  0xb6   :  { %v3131_v13 = vpop.eup %2956  ;;  %v232_v19 = vmul.f32 2.0, %v3129_v11 }
  0xb7   :  { %v231_v21 = vmul.f32 2.0, %v3131_v13 }
  0xb8   :  { %v3144_v22 = vmul.f32 %v3129_v11, %v232_v19 }
  0xb9   :  { %v3153_v25 = vmul.f32 %v3131_v13, %v231_v21 }
  0xe9   :  { %v2626_v12 = vpop.f32.mrb[0].mxu0 }
  0xea   :  { %v147_v14 = vmul.f32 %v3129_v11, %v2626_v12  ;;  %v126_v15 = vpop.f32.mrb[1].mxu0  ;;  %v236_v27 = vmul.f32 %v2626_v12, %v3144_v22 }
  0xeb   :  { %v146_v16 = vmul.f32 %v3131_v13, %v126_v15  ;;  %v235_v31 = vmul.f32 %v3153_v25, %v126_v15  ;;  %v557_v15 = vld [vmem:[#allocation2 + $0x30] sm:$0xff] }
  0xed   :  { %v2816_v17 = vpack.c.bf16 %v147_v14, %v146_v16  ;;  %v558_v16 = vld [vmem:[#allocation2 + $0x38] sm:$0xff] }
  0xef   :  { %2817 = vmatprep.subr.bf16.mxu0 %v2816_v17 }
  0xf0   :  { %2819 = vmatpush3.bf16.msra.mxu0 %v2816_v17  ;;  %v2840_v17 = vpack.c.bf16 %v558_v16, %v557_v15 }
  0xf1   :  { %2821 = vmatprep.subr.bf16.mxu0 %v2820_v54 }
  0xf3   :  { %2632 = vmatmul.mubr.msk.f32.vlgmr.msra.gmra.mrb[2].mxu0 %vm135_vm2, %v3121_v4 }
  0xf4   :  { %2638 = vmatprep.mubr.msk.f32.mxu0 %vm135_vm2, %v3116_v3  ;;  %2823 = vmatpush3.bf16.msra.mxu0 %v2820_v54 }
  0xf7   :  { %2639 = vmatmul.mubr.msk.f32.vlgmr.msra.gmra.mrb[4].mxu0 %vm135_vm2, %v3121_v4 }
  0xf8   :  { %2652 = vmatprep.mubr.msk.f32.mxu0 %vm354_vm6, %v3060_v53 }
 0x1c6   :  { %v2633_v26 = vpop.f32.mrb[2].mxu0 }
 0x1c7   :  { %v230_v28 = vmul.f32 %v3129_v11, %v2633_v26  ;;  %v220_v30 = vpop.f32.mrb[3].mxu0 }
 0x1c8   :  { %v229_v32 = vmul.f32 %v3131_v13, %v220_v30 }
 0x1c9   :  { %v238_v33 = vadd.f32 %v236_v27, %v230_v28 }
 0x1ca   :  { %v237_v34 = vadd.f32 %v235_v31, %v229_v32  ;;  %v2640_v63 = vpop.f32.mrb[4].mxu0  ;;  %v258_v31 = vmul.f32 2.0, %v3121_v4  ;;  %v257_v32 = vmul.f32 2.0, %v3116_v3 }
 0x1cb   :  { %v244_v35 = vadd.f32 %v242_v29, %v238_v33  ;;  %v325_v5 = vpop.f32.mrb[5].mxu0 }
 0x1cc   :  { %v243_v36 = vadd.f32 %v242_v29, %v237_v34  ;;  %v331_v33 = vadd.f32 %v2640_v63, %v258_v31  ;;  %v326_v34 = vadd.f32 %v325_v5, %v257_v32 }
 0x1cd   :  { %v248_v37 = vmin.f32 %v244_v35, 0.0  ;;  %vm246_vm4 = vcmp.gt.f32.partialorder %v244_v35, 0.0 }
 0x1ce   :  { %v247_v38 = vmin.f32 %v243_v36, 0.0  ;;  %vm245_vm3 = vcmp.gt.f32.partialorder %v243_v36, 0.0 }
 0x1cf   :  { %v251_v39 = vmul.f32 1.442695, %v248_v37  ;;  %v335_v37 = vsel %vm47_vm8, 0.0, %v331_v33 }
 0x1d0   :  { %v249_v40 = vmul.f32 1.442695, %v247_v38 }
 0x1d1   :  { %2958 = vpow2.f32 %v251_v39 }
 0x1d2   :  { %2960 = vpow2.f32 %v249_v40 }
 0x1db   :  { %v2959_v42 = vpop.eup %2958 }
 0x1dc   :  { %v2961_v43 = vpop.eup %2960  ;;  %v2436_v45 = vadd.f32 -1.0, %v2959_v42 }
 0x1dd   :  { %v2435_v46 = vadd.f32 -1.0, %v2961_v43 }
 0x1de   :  { %v3168_v48 = vsel %vm246_vm4, %v244_v35, %v2436_v45 }
 0x1df   :  { %v3166_v47 = vsel %vm245_vm3, %v243_v36, %v2435_v46  ;;  %v341_v51 = vmul.f32 %v339_v44, %v3168_v48 }
 0x1e0   :  { %v340_v49 = vmul.f32 %v339_v44, %v3166_v47 }
 0x1e1   :  { %v346_v52 = vsel %vm342_vm5, %v341_v51, 0.0 }
 0x1e2   :  { %v343_v50 = vsel %vm342_vm5, %v340_v49, 0.0 }
 0x1e3   :  { %344 = vadd.xlane.f32.xlu1 %v343_v50 }
 0x1e7   :  { %347 = vadd.xlane.f32.xlu1 %v346_v52 }
 0x270   :  { %v345_v55 = vpop.xlane.xlu1 %344 }
 0x271   :  { %2962 = vtanh.f32 %v345_v55 }
 0x274   :  { %v348_v56 = vpop.xlane.xlu1 %347 }
 0x275   :  { %2964 = vtanh.f32 %v348_v56 }
 0x27b   :  { %v2963_v57 = vpop.eup %2962 }
 0x27c   :  { %v546_v23 = vmul.f32 %v2963_v57, %v3166_v47 }
 0x27f   :  { %v2965_v58 = vpop.eup %2964 }
 0x280   :  { %v2824_v60 = vpack.c.bf16 %v2965_v58, %v2963_v57  ;;  %v547_v26 = vmul.f32 %v2965_v58, %v3168_v48 }
 0x282   :  { %2826 = vmatprep.subr.msk.bf16.mxu1 %vm3184_vm7, %v2824_v60 }
 0x283   :  { %2829 = vmatpush3.bf16.xpose.msk.msra.mxu1 %vm3184_vm7, %v2824_v60 }
 0x284   :  { %2837 = vmatprep.subr.bf16.mxu1 %v2836_v2 }
 0x28a   :  { %2646 = vmatmul.mubr.msk.f32.vlgmr.msra.gmra.mrb[0].mxu1 %vm354_vm6, %v3060_v53 }
 0x28b   :  { %2839 = vmatpush3.bf16.msra.mxu1 %v2836_v2 }
 0x28c   :  { %2841 = vmatprep.subr.bf16.mxu1 %v2840_v17 }
 0x28f   :  { %2843 = vmatpush3.bf16.msra.mxu1 %v2840_v17 }
 0x35d   :  { %v2647_v6 = vpop.f32.mrb[0].mxu1 }
 0x35e   :  { %vm440_vm11 = vcmp.gt.f32.partialorder %v2647_v6, %v2965_v58  ;;  %vm442_vm12 = vcmp.eq.f32.partialorder %v2647_v6, %v2965_v58  ;;  %v430_v7 = vpop.f32.mrb[1].mxu1 }
 0x35f   :  { %vm446_vm13 = vmand %vm442_vm12, %vm444_vm9  ;;  %vm439_vm14 = vcmp.gt.f32.partialorder %v430_v7, %v2963_v57  ;;  %vm441_vm15 = vcmp.eq.f32.partialorder %v430_v7, %v2963_v57  ;;  %vm46_vm12 = vcmp.eq.s32.totalorder %v3140_v20, %v3197_v62 }
 0x360   :  { %vm445_vm0 = vmand %vm441_vm15, %vm443_vm10  ;;  %v334_v38 = vsel %vm46_vm12, 0.0, %v326_v34  ;;  %v845_v34 = vrot.slane %v3163_v41, %v745_v1 }
 0x361   :  { %vm448_vm1 = vmor %vm440_vm11, %vm446_vm13 }
 0x362   :  { %v2444_v9 = vsel %vm448_vm1, 1.0, %v3061_v8  ;;  %vm447_vm3 = vmor %vm439_vm14, %vm445_vm0 }
 0x363   :  { %v456_v10 = vsel %vm135_vm2, %v2444_v9, 0.0  ;;  %v2443_v12 = vsel %vm447_vm3, 1.0, %v3061_v8  ;;  %v746_v9 = vrot.slane %v3150_v24, %v745_v1 }
 0x364   :  { %457 = vadd.xlane.f32.xlu1 %v456_v10  ;;  %v453_v14 = vsel %vm135_vm2, %v2443_v12, 0.0 }
 0x365   :  { %454 = vadd.xlane.f32.xlu0 %v453_v14 }
 0x3f1   :  { %v458_v18 = vpop.xlane.xlu1 %457 }
 0x3f2   :  { %vm460_vm4 = vcmp.lt.f32.partialorder %v458_v18, 8.0  ;;  %v455_v19 = vpop.xlane.xlu0 %454 }
 0x3f3   :  { %v3216_v21 = vsel %vm460_vm4, 1.0, %v3061_v8  ;;  %vm459_vm11 = vcmp.lt.f32.partialorder %v455_v19, 8.0 }
 0x3f4   :  { %v3221_v27 = vsel %vm459_vm11, 1.0, %v3061_v8  ;;  %v549_v30 = vmul.f32 %v3216_v21, %v547_v26  ;;  %v551_v39 = vmul.f32 %v3216_v21, %v335_v37  ;;  %vm857_vm15 = vcmp.gt.f32.partialorder %v3216_v21, 0.0 }
 0x3f5   :  { %v2830_v28 = vpack.c.bf16 %v3216_v21, %v3221_v27  ;;  %v548_v29 = vmul.f32 %v3221_v27, %v546_v23  ;;  %v550_v3 = vmul.f32 %v3221_v27, %v334_v38  ;;  %vm856_vm0 = vcmp.gt.f32.partialorder %v3221_v27, 0.0 }
 0x3f7   :  { %2832 = vmatprep.subr.msk.bf16.mxu0 %vm3184_vm7, %v2830_v28  ;;  %2663 = vmatprep.mubr.msk.f32.mxu1 %vm342_vm5, %v548_v29 }
 0x3f8   :  { %2835 = vmatpush3.bf16.xpose.msk.msra.mxu0 %vm3184_vm7, %v2830_v28  ;;  %2664 = vmatmul.mubr.msk.f32.vlgmr.msra.gmra.mrb[2].mxu1 %vm342_vm5, %v549_v30 }
 0x3f9   :  { %2684 = vmatprep.mubr.msk.f32.mxu1 %vm354_vm6, %v3060_v53 }
 0x3ff   :  { %2653 = vmatmul.mubr.msk.f32.vlgmr.msra.gmra.mrb[6].mxu0 %vm354_vm6, %v3060_v53 }
 0x4cb   :  { %v2665_v35 = vpop.f32.mrb[2].mxu1 }
 0x4cc   :  { %v631_v36 = vpop.f32.mrb[3].mxu1 }
 0x4d2   :  { %v2654_v4 = vpop.f32.mrb[6].mxu0 }
 0x4d3   :  { %v3249_v40 = vmul.f32 %v2654_v4, %v551_v39  ;;  %v537_v42 = vpop.f32.mrb[7].mxu0 }
 0x4d4   :  { %v3251_v43 = vmul.f32 %v550_v3, %v537_v42 }
 0x4d5   :  { %v643_v44 = vsel %vm135_vm2, %v3249_v40, 0.0 }
 0x4d6   :  { %644 = vadd.xlane.f32.xlu1 %v643_v44  ;;  %2670 = vmatprep.mubr.msk.f32.mxu0 %vm135_vm2, %v3251_v43  ;;  %v640_v45 = vsel %vm135_vm2, %v3251_v43, 0.0  ;;  %v2848_v58 = vpack.c.bf16 %v3249_v40, %v3251_v43 }
 0x4d7   :  { %641 = vadd.xlane.f32.xlu0 %v640_v45 }
 0x563   :  { %v645_v46 = vpop.xlane.xlu1 %644 }
 0x564   :  { %v647_v49 = vadd.f32 2.0, %v645_v46  ;;  %v642_v50 = vpop.xlane.xlu0 %641 }
 0x565   :  { %v646_v51 = vadd.f32 2.0, %v642_v50 }
 0x566   :  { %2966 = vrsqrt.f32 %v647_v49 }
 0x567   :  { %2968 = vrsqrt.f32 %v646_v51 }
 0x570   :  { %v3259_v52 = vpop.eup %2966 }
 0x571   :  { %v3261_v54 = vpop.eup %2968  ;;  %v651_v55 = vmul.f32 %v3259_v52, %v2665_v35  ;;  %v736_v60 = vmul.f32 2.0, %v3259_v52 }
 0x572   :  { %v650_v56 = vmul.f32 %v3261_v54, %v631_v36  ;;  %v735_v63 = vmul.f32 2.0, %v3261_v54 }
 0x573   :  { %v3278_v0 = vmul.f32 %v3259_v52, %v736_v60 }
 0x574   :  { %v2844_v57 = vpack.c.bf16 %v651_v55, %v650_v56  ;;  %v3282_v2 = vmul.f32 %v3261_v54, %v735_v63 }
 0x575   :  { %v740_v7 = vmul.f32 %v2665_v35, %v3278_v0 }
 0x576   :  { %2845 = vmatprep.subr.bf16.mxu0 %v2844_v57  ;;  %v739_v14 = vmul.f32 %v3282_v2, %v631_v36 }
 0x577   :  { %2847 = vmatpush3.bf16.msra.mxu0 %v2844_v57  ;;  %v1055_v57 = vld [vmem:[#allocation2 + $0x40] sm:$0xff] }
 0x578   :  { %2849 = vmatprep.subr.bf16.mxu0 %v2848_v58 }
 0x57a   :  { %2671 = vmatmul.mubr.msk.f32.vlgmr.msra.gmra.mrb[8].mxu0 %vm135_vm2, %v3249_v40 }
 0x57b   :  { %2851 = vmatpush3.bf16.msra.mxu0 %v2848_v58  ;;  %2677 = vmatprep.mubr.msk.f32.mxu0 %vm135_vm2, %v3251_v43  ;;  %v1056_v58 = vld [vmem:[#allocation2 + $0x48] sm:$0xff] }
 0x57c   :  { %v2864_v60 = vpack.c.bf16 %v1056_v58, %v1055_v57 }
 0x57e   :  { %2678 = vmatmul.mubr.msk.f32.vlgmr.msra.gmra.mrb[10].mxu0 %vm135_vm2, %v3249_v40 }
 0x57f   :  { %2691 = vmatprep.mubr.msk.f32.mxu0 %vm354_vm6, %v3060_v53 }
 0x64d   :  { %v2672_v5 = vpop.f32.mrb[8].mxu0 }
 0x64e   :  { %v734_v6 = vmul.f32 %v3259_v52, %v2672_v5  ;;  %v724_v10 = vpop.f32.mrb[9].mxu0 }
 0x64f   :  { %v733_v12 = vmul.f32 %v3261_v54, %v724_v10  ;;  %v1057_v10 = vld [vmem:[#allocation2 + $0x50] sm:$0xff] }
 0x650   :  { %v742_v15 = vadd.f32 %v740_v7, %v734_v6 }
 0x651   :  { %v741_v16 = vadd.f32 %v739_v14, %v733_v12  ;;  %v3289_v17 = vpop.f32.mrb[10].mxu0  ;;  %v1058_v12 = vld [vmem:[#allocation2 + $0x58] sm:$0xff] }
 0x652   :  { %v748_v18 = vadd.f32 %v746_v9, %v742_v15  ;;  %v3291_v19 = vpop.f32.mrb[11].mxu0  ;;  %v2868_v14 = vpack.c.bf16 %v1058_v12, %v1057_v10  ;;  %v1245_v12 = vsub.s32 2, %v3140_v20 }
 0x653   :  { %v747_v23 = vadd.f32 %v746_v9, %v741_v16 }
 0x654   :  { %v750_v26 = vmul.f32 %v3216_v21, %v748_v18 }
 0x655   :  { %v749_v28 = vmul.f32 %v3221_v27, %v747_v23 }
 0x656   :  { %v754_v29 = vmin.f32 %v750_v26, 0.0  ;;  %vm752_vm13 = vcmp.gt.f32.partialorder %v750_v26, 0.0 }
 0x657   :  { %v753_v30 = vmin.f32 %v749_v28, 0.0  ;;  %vm751_vm14 = vcmp.gt.f32.partialorder %v749_v28, 0.0 }
 0x658   :  { %v757_v31 = vmul.f32 1.442695, %v754_v29 }
 0x659   :  { %v755_v32 = vmul.f32 1.442695, %v753_v30 }
 0x65a   :  { %2970 = vpow2.f32 %v757_v31 }
 0x65b   :  { %2972 = vpow2.f32 %v755_v32  ;;  %v764_v32 = vmul.f32 2.0, %v3249_v40 }
 0x664   :  { %v2971_v33 = vpop.eup %2970 }
 0x665   :  { %v2973_v35 = vpop.eup %2972  ;;  %v2456_v36 = vadd.f32 -1.0, %v2971_v33  ;;  %v763_v33 = vmul.f32 2.0, %v3251_v43 }
 0x666   :  { %v2455_v37 = vadd.f32 -1.0, %v2973_v35  ;;  %v837_v35 = vadd.f32 %v3289_v17, %v764_v32 }
 0x667   :  { %v3296_v38 = vsel %vm752_vm13, %v750_v26, %v2456_v36 }
 0x668   :  { %v847_v39 = vmul.f32 %v845_v34, %v3296_v38  ;;  %v3299_v4 = vsel %vm751_vm14, %v749_v28, %v2455_v37  ;;  %v832_v37 = vadd.f32 %v3291_v19, %v763_v33 }
 0x669   :  { %v846_v3 = vmul.f32 %v845_v34, %v3299_v4 }
 0x66a   :  { %v851_v42 = vsel %vm342_vm5, %v847_v39, 0.0  ;;  %v841_v39 = vsel %vm47_vm8, 0.0, %v837_v35 }
 0x66b   :  { %852 = vadd.xlane.f32.xlu1 %v851_v42  ;;  %v848_v44 = vsel %vm342_vm5, %v846_v3, 0.0  ;;  %v840_v3 = vsel %vm46_vm12, 0.0, %v832_v37 }
 0x66c   :  { %849 = vadd.xlane.f32.xlu0 %v848_v44 }
 0x6f8   :  { %v853_v45 = vpop.xlane.xlu1 %852 }
 0x6f9   :  { %2974 = vtanh.f32 %v853_v45  ;;  %v850_v46 = vpop.xlane.xlu0 %849 }
 0x6fa   :  { %2976 = vtanh.f32 %v850_v46 }
 0x703   :  { %v2975_v49 = vpop.eup %2974 }
 0x704   :  { %v2977_v50 = vpop.eup %2976  ;;  %v859_v51 = vsel %vm857_vm15, %v2975_v49, -2.0  ;;  %v1047_v26 = vmul.f32 %v2975_v49, %v3296_v38 }
 0x705   :  { %v858_v55 = vsel %vm856_vm0, %v2977_v50, -2.0  ;;  %v1046_v23 = vmul.f32 %v2977_v50, %v3299_v4 }
 0x706   :  { %v2852_v56 = vpack.c.bf16 %v859_v51, %v858_v55 }
 0x708   :  { %2854 = vmatprep.subr.msk.bf16.mxu1 %vm3184_vm7, %v2852_v56 }
 0x709   :  { %2857 = vmatpush3.bf16.xpose.msk.msra.mxu1 %vm3184_vm7, %v2852_v56 }
 0x70a   :  { %2865 = vmatprep.subr.bf16.mxu1 %v2864_v60 }
 0x710   :  { %2685 = vmatmul.mubr.msk.f32.vlgmr.msra.gmra.mrb[4].mxu1 %vm354_vm6, %v3060_v53 }
 0x711   :  { %2867 = vmatpush3.bf16.msra.mxu1 %v2864_v60 }
 0x712   :  { %2869 = vmatprep.subr.bf16.mxu1 %v2868_v14 }
 0x715   :  { %2871 = vmatpush3.bf16.msra.mxu1 %v2868_v14 }
 0x7e3   :  { %v2686_v63 = vpop.f32.mrb[4].mxu1 }
 0x7e4   :  { %vm942_vm1 = vcmp.gt.f32.partialorder %v2686_v63, %v859_v51  ;;  %vm944_vm3 = vcmp.eq.f32.partialorder %v2686_v63, %v859_v51  ;;  %v932_v1 = vpop.f32.mrb[5].mxu1 }
 0x7e5   :  { %vm946_vm4 = vmand %vm944_vm3, %vm444_vm9  ;;  %vm941_vm11 = vcmp.gt.f32.partialorder %v932_v1, %v858_v55  ;;  %vm943_vm13 = vcmp.eq.f32.partialorder %v932_v1, %v858_v55 }
 0x7e6   :  { %vm945_vm14 = vmand %vm943_vm13, %vm443_vm10 }
 0x7e7   :  { %vm948_vm15 = vmor %vm942_vm1, %vm946_vm4 }
 0x7e8   :  { %v2464_v5 = vsel %vm948_vm15, 1.0, %v3061_v8  ;;  %vm947_vm0 = vmor %vm941_vm11, %vm945_vm14 }
 0x7e9   :  { %v956_v6 = vsel %vm135_vm2, %v2464_v5, 0.0  ;;  %v2463_v7 = vsel %vm947_vm0, 1.0, %v3061_v8 }
 0x7ea   :  { %957 = vadd.xlane.f32.xlu1 %v956_v6  ;;  %v953_v9 = vsel %vm135_vm2, %v2463_v7, 0.0 }
 0x7eb   :  { %954 = vadd.xlane.f32.xlu0 %v953_v9 }
 0x877   :  { %v958_v15 = vpop.xlane.xlu1 %957 }
 0x878   :  { %vm960_vm3 = vcmp.lt.f32.partialorder %v958_v15, 4.0  ;;  %v955_v16 = vpop.xlane.xlu0 %954 }
 0x879   :  { %v3323_v18 = vsel %vm960_vm3, 1.0, %v3061_v8  ;;  %vm959_vm1 = vcmp.lt.f32.partialorder %v955_v16, 4.0 }
 0x87a   :  { %v3328_v28 = vsel %vm959_vm1, 1.0, %v3061_v8  ;;  %v1049_v31 = vmul.f32 %v3323_v18, %v1047_v26  ;;  %v1051_v42 = vmul.f32 %v3323_v18, %v841_v39  ;;  %v1246_v26 = vrot.slane %v3150_v24, %v1245_v12 }
 0x87b   :  { %v2858_v29 = vpack.c.bf16 %v3323_v18, %v3328_v28  ;;  %v1048_v30 = vmul.f32 %v3328_v28, %v1046_v23  ;;  %v1050_v45 = vmul.f32 %v3328_v28, %v840_v3  ;;  %vm1357_vm13 = vcmp.gt.f32.partialorder %v3323_v18, 0.0 }
 0x87c   :  { %vm1356_vm14 = vcmp.gt.f32.partialorder %v3328_v28, 0.0 }
 0x87d   :  { %2860 = vmatprep.subr.msk.bf16.mxu0 %vm3184_vm7, %v2858_v29  ;;  %2702 = vmatprep.mubr.msk.f32.mxu1 %vm342_vm5, %v1048_v30 }
 0x87e   :  { %2863 = vmatpush3.bf16.xpose.msk.msra.mxu0 %vm3184_vm7, %v2858_v29  ;;  %2703 = vmatmul.mubr.msk.f32.vlgmr.msra.gmra.mrb[6].mxu1 %vm342_vm5, %v1049_v31 }
 0x87f   :  { %2723 = vmatprep.mubr.msk.f32.mxu1 %vm354_vm6, %v3060_v53 }
 0x885   :  { %2692 = vmatmul.mubr.msk.f32.vlgmr.msra.gmra.mrb[12].mxu0 %vm354_vm6, %v3060_v53 }
 0x951   :  { %v2704_v34 = vpop.f32.mrb[6].mxu1 }
 0x952   :  { %v1131_v36 = vpop.f32.mrb[7].mxu1 }
 0x958   :  { %v2693_v44 = vpop.f32.mrb[12].mxu0 }
 0x959   :  { %v3356_v46 = vmul.f32 %v2693_v44, %v1051_v42  ;;  %v1037_v49 = vpop.f32.mrb[13].mxu0 }
 0x95a   :  { %v3358_v17 = vmul.f32 %v1050_v45, %v1037_v49 }
 0x95b   :  { %v1143_v19 = vsel %vm135_vm2, %v3356_v46, 0.0 }
 0x95c   :  { %1144 = vadd.xlane.f32.xlu1 %v1143_v19  ;;  %2709 = vmatprep.mubr.msk.f32.mxu0 %vm135_vm2, %v3358_v17  ;;  %v1140_v50 = vsel %vm135_vm2, %v3358_v17, 0.0  ;;  %v2876_v6 = vpack.c.bf16 %v3356_v46, %v3358_v17 }
 0x95d   :  { %1141 = vadd.xlane.f32.xlu0 %v1140_v50 }
 0x9e9   :  { %v1145_v51 = vpop.xlane.xlu1 %1144 }
 0x9ea   :  { %v1147_v55 = vadd.f32 2.0, %v1145_v51  ;;  %v1142_v56 = vpop.xlane.xlu0 %1141 }
 0x9eb   :  { %v1146_v57 = vadd.f32 2.0, %v1142_v56 }
 0x9ec   :  { %2978 = vrsqrt.f32 %v1147_v55 }
 0x9ed   :  { %2980 = vrsqrt.f32 %v1146_v57 }
 0x9f6   :  { %v3366_v58 = vpop.eup %2978 }
 0x9f7   :  { %v3368_v60 = vpop.eup %2980  ;;  %v1151_v63 = vmul.f32 %v3366_v58, %v2704_v34  ;;  %v1236_v7 = vmul.f32 2.0, %v3366_v58 }
 0x9f8   :  { %v1150_v1 = vmul.f32 %v3368_v60, %v1131_v36  ;;  %v1235_v9 = vmul.f32 2.0, %v3368_v60 }
 0x9f9   :  { %v3385_v10 = vmul.f32 %v3366_v58, %v1236_v7 }
 0x9fa   :  { %v2872_v5 = vpack.c.bf16 %v1151_v63, %v1150_v1  ;;  %v3389_v14 = vmul.f32 %v3368_v60, %v1235_v9 }
 0x9fb   :  { %v1240_v23 = vmul.f32 %v2704_v34, %v3385_v10 }
 0x9fc   :  { %2873 = vmatprep.subr.bf16.mxu0 %v2872_v5  ;;  %v1239_v31 = vmul.f32 %v3389_v14, %v1131_v36  ;;  %v1345_v36 = vrot.slane %v3163_v41, %v1245_v12 }
 0x9fd   :  { %2875 = vmatpush3.bf16.msra.mxu0 %v2872_v5 }
 0x9fe   :  { %2877 = vmatprep.subr.bf16.mxu0 %v2876_v6 }
 0xa00   :  { %2710 = vmatmul.mubr.msk.f32.vlgmr.msra.gmra.mrb[14].mxu0 %vm135_vm2, %v3356_v46 }
 0xa01   :  { %2879 = vmatpush3.bf16.msra.mxu0 %v2876_v6  ;;  %2716 = vmatprep.mubr.msk.f32.mxu0 %vm135_vm2, %v3358_v17 }
 0xa04   :  { %2717 = vmatmul.mubr.msk.f32.vlgmr.msra.gmra.mrb[16].mxu0 %vm135_vm2, %v3356_v46 }
 0xa05   :  { %2730 = vmatprep.mubr.msk.f32.mxu0 %vm354_vm6, %v3060_v53 }
 0xad3   :  { %v2711_v15 = vpop.f32.mrb[14].mxu0 }
 0xad4   :  { %v1234_v16 = vmul.f32 %v3366_v58, %v2711_v15  ;;  %v1224_v29 = vpop.f32.mrb[15].mxu0 }
 0xad5   :  { %v1233_v30 = vmul.f32 %v3368_v60, %v1224_v29  ;;  %v1555_v29 = vld [vmem:[#allocation2 + $0x60] sm:$0xff] }
 0xad6   :  { %v1242_v32 = vadd.f32 %v1240_v23, %v1234_v16 }
 0xad7   :  { %v1241_v33 = vadd.f32 %v1239_v31, %v1233_v30  ;;  %v3396_v35 = vpop.f32.mrb[16].mxu0  ;;  %v1556_v30 = vld [vmem:[#allocation2 + $0x68] sm:$0xff] }
 0xad8   :  { %v1248_v37 = vadd.f32 %v1246_v26, %v1242_v32  ;;  %v3398_v39 = vpop.f32.mrb[17].mxu0  ;;  %v2892_v31 = vpack.c.bf16 %v1556_v30, %v1555_v29 }
 0xad9   :  { %v1247_v3 = vadd.f32 %v1246_v26, %v1241_v33 }
 0xada   :  { %v1250_v42 = vmul.f32 %v3323_v18, %v1248_v37 }
 0xadb   :  { %v1249_v44 = vmul.f32 %v3328_v28, %v1247_v3 }
 0xadc   :  { %v1254_v34 = vmin.f32 %v1250_v42, 0.0  ;;  %vm1252_vm4 = vcmp.gt.f32.partialorder %v1250_v42, 0.0 }
 0xadd   :  { %v1253_v45 = vmin.f32 %v1249_v44, 0.0  ;;  %vm1251_vm11 = vcmp.gt.f32.partialorder %v1249_v44, 0.0 }
 0xade   :  { %v1257_v49 = vmul.f32 1.442695, %v1254_v34  ;;  %v1557_v34 = vld [vmem:[#allocation2 + $0x70] sm:$0xff] }
 0xadf   :  { %v1255_v19 = vmul.f32 1.442695, %v1253_v45  ;;  %v1558_v45 = vld [vmem:[#allocation2 + $0x78] sm:$0xff] }
 0xae0   :  { %2982 = vpow2.f32 %v1257_v49  ;;  %v2896_v49 = vpack.c.bf16 %v1558_v45, %v1557_v34  ;;  %v1766_v45 = vld [vmem:[#allocation2 + $0x80] sm:$0xff] }
 0xae1   :  { %2984 = vpow2.f32 %v1255_v19 }
 0xaea   :  { %v2983_v50 = vpop.eup %2982 }
 0xaeb   :  { %v2985_v51 = vpop.eup %2984  ;;  %v2476_v55 = vadd.f32 -1.0, %v2983_v50 }
 0xaec   :  { %v2475_v56 = vadd.f32 -1.0, %v2985_v51 }
 0xaed   :  { %v3403_v57 = vsel %vm1252_vm4, %v1250_v42, %v2476_v55 }
 0xaee   :  { %v1347_v63 = vmul.f32 %v1345_v36, %v3403_v57  ;;  %v3406_v1 = vsel %vm1251_vm11, %v1249_v44, %v2475_v56 }
 0xaef   :  { %v1346_v5 = vmul.f32 %v1345_v36, %v3406_v1 }
 0xaf0   :  { %v1351_v6 = vsel %vm342_vm5, %v1347_v63, 0.0 }
 0xaf1   :  { %1352 = vadd.xlane.f32.xlu1 %v1351_v6  ;;  %v1348_v7 = vsel %vm342_vm5, %v1346_v5, 0.0 }
 0xaf2   :  { %1349 = vadd.xlane.f32.xlu0 %v1348_v7  ;;  %v1264_v7 = vmul.f32 2.0, %v3356_v46 }
 0xb7e   :  { %v1353_v41 = vpop.xlane.xlu1 %1352 }
 0xb7f   :  { %2986 = vtanh.f32 %v1353_v41  ;;  %v1350_v9 = vpop.xlane.xlu0 %1349  ;;  %v1263_v41 = vmul.f32 2.0, %v3358_v17 }
 0xb80   :  { %2988 = vtanh.f32 %v1350_v9 }
 0xb89   :  { %v2987_v12 = vpop.eup %2986 }
 0xb8a   :  { %v2989_v15 = vpop.eup %2988  ;;  %v1359_v16 = vsel %vm1357_vm13, %v2987_v12, -2.0  ;;  %v1547_v55 = vmul.f32 %v2987_v12, %v3403_v57  ;;  %v1337_v12 = vadd.f32 %v3396_v35, %v1264_v7  ;;  %v1745_v7 = vsub.s32 3, %v3140_v20 }
 0xb8b   :  { %v1358_v23 = vsel %vm1356_vm14, %v2989_v15, -2.0  ;;  %v1546_v51 = vmul.f32 %v2989_v15, %v3406_v1 }
 0xb8c   :  { %v2880_v26 = vpack.c.bf16 %v1359_v16, %v1358_v23  ;;  %v1341_v59 = vsel %vm47_vm8, 0.0, %v1337_v12 }
 0xb8e   :  { %2882 = vmatprep.subr.msk.bf16.mxu1 %vm3184_vm7, %v2880_v26 }
 0xb8f   :  { %2885 = vmatpush3.bf16.xpose.msk.msra.mxu1 %vm3184_vm7, %v2880_v26 }
 0xb90   :  { %2893 = vmatprep.subr.bf16.mxu1 %v2892_v31 }
 0xb96   :  { %2724 = vmatmul.mubr.msk.f32.vlgmr.msra.gmra.mrb[8].mxu1 %vm354_vm6, %v3060_v53 }
 0xb97   :  { %2895 = vmatpush3.bf16.msra.mxu1 %v2892_v31 }
 0xb98   :  { %2897 = vmatprep.subr.bf16.mxu1 %v2896_v49 }
 0xb9b   :  { %2899 = vmatpush3.bf16.msra.mxu1 %v2896_v49  ;;  %v1767_v49 = vld [vmem:[#allocation2 + $0x88] sm:$0xff] }
 0xc69   :  { %v2725_v32 = vpop.f32.mrb[8].mxu1 }
 0xc6a   :  { %vm1442_vm15 = vcmp.gt.f32.partialorder %v2725_v32, %v1359_v16  ;;  %vm1444_vm0 = vcmp.eq.f32.partialorder %v2725_v32, %v1359_v16  ;;  %v1432_v33 = vpop.f32.mrb[9].mxu1  ;;  %v1332_v16 = vadd.f32 %v3398_v39, %v1263_v41 }
 0xc6b   :  { %vm1446_vm3 = vmand %vm1444_vm0, %vm444_vm9  ;;  %vm1441_vm1 = vcmp.gt.f32.partialorder %v1432_v33, %v1358_v23  ;;  %vm1443_vm4 = vcmp.eq.f32.partialorder %v1432_v33, %v1358_v23 }
 0xc6c   :  { %vm1445_vm11 = vmand %vm1443_vm4, %vm443_vm10  ;;  %v1340_v23 = vsel %vm46_vm12, 0.0, %v1332_v16 }
 0xc6d   :  { %vm1448_vm13 = vmor %vm1442_vm15, %vm1446_vm3  ;;  %vm3063_vm3 = vmmov 0  }
 0xc6e   :  { %v2484_v37 = vsel %vm1448_vm13, 1.0, %v3061_v8  ;;  %vm1447_vm14 = vmor %vm1441_vm1, %vm1445_vm11 }
 0xc6f   :  { %v1456_v3 = vsel %vm135_vm2, %v2484_v37, 0.0  ;;  %v2483_v42 = vsel %vm1447_vm14, 1.0, %v3061_v8 }
 0xc70   :  { %1457 = vadd.xlane.f32.xlu1 %v1456_v3  ;;  %v1453_v44 = vsel %vm135_vm2, %v2483_v42, 0.0 }
 0xc71   :  { %1454 = vadd.xlane.f32.xlu0 %v1453_v44 }
 0xcfd   :  { %v1458_v19 = vpop.xlane.xlu1 %1457 }
 0xcfe   :  { %vm1460_vm9 = vcmp.lt.f32.partialorder %v1458_v19, 2.0  ;;  %v1455_v50 = vpop.xlane.xlu0 %1454  ;;  %v2904_v19 = vpack.c.bf16 %v1767_v49, %v1766_v45 }
 0xcff   :  { %v3430_v36 = vsel %vm1460_vm9, 1.0, %v3061_v8  ;;  %vm1459_vm10 = vcmp.lt.f32.partialorder %v1455_v50, 2.0  ;;  %v1768_v50 = vld [vmem:[#allocation2 + $0x90] sm:$0xff] }
 0xd00   :  { %v3435_v56 = vsel %vm1459_vm10, 1.0, %v3061_v8  ;;  %v1549_v6 = vmul.f32 %v3430_v36, %v1547_v55 }
 0xd01   :  { %v2886_v63 = vpack.c.bf16 %v3430_v36, %v3435_v56  ;;  %v1548_v5 = vmul.f32 %v3435_v56, %v1546_v51  ;;  %v1550_v29 = vmul.f32 %v3435_v56, %v1340_v23  ;;  %v1769_v51 = vld [vmem:[#allocation2 + $0x98] sm:$0xff]  ;;  %v1746_v23 = vrot.slane %v3150_v24, %v1745_v7 }
 0xd02   :  { %v2908_v55 = vpack.c.bf16 %v1769_v51, %v1768_v50 }
 0xd03   :  { %2888 = vmatprep.subr.msk.bf16.mxu0 %vm3184_vm7, %v2886_v63  ;;  %2741 = vmatprep.mubr.msk.f32.mxu1 %vm342_vm5, %v1548_v5 }
 0xd04   :  { %2891 = vmatpush3.bf16.xpose.msk.msra.mxu0 %vm3184_vm7, %v2886_v63  ;;  %2742 = vmatmul.mubr.msk.f32.vlgmr.msra.gmra.mrb[10].mxu1 %vm342_vm5, %v1549_v6 }
 0xd05   :  { %2766 = vmatprep.mubr.msk.f32.mxu1 %vm135_vm2, %v3358_v17 }
 0xd0b   :  { %2731 = vmatmul.mubr.msk.f32.vlgmr.msra.gmra.mrb[18].mxu0 %vm354_vm6, %v3060_v53  ;;  %v1551_v53 = vmul.f32 %v3430_v36, %v1341_v59 }
 0xdd7   :  { %v2743_v9 = vpop.f32.mrb[10].mxu1 }
 0xdd8   :  { %v1631_v15 = vpop.f32.mrb[11].mxu1 }
 0xdde   :  { %v2732_v26 = vpop.f32.mrb[18].mxu0 }
 0xddf   :  { %v1553_v17 = vmul.f32 %v2732_v26, %v1551_v53  ;;  %v1537_v30 = vpop.f32.mrb[19].mxu0 }
 0xde0   :  { %v1552_v31 = vmul.f32 %v1550_v29, %v1537_v30 }
 0xde1   :  { %v1643_v35 = vsel %vm135_vm2, %v1553_v17, 0.0 }
 0xde2   :  { %1644 = vadd.xlane.f32.xlu1 %v1643_v35  ;;  %2748 = vmatprep.mubr.msk.f32.mxu0 %vm135_vm2, %v1552_v31  ;;  %v1640_v61 = vsel %vm135_vm2, %v1552_v31, 0.0 }
 0xde3   :  { %1641 = vadd.xlane.f32.xlu0 %v1640_v61 }
 0xe6f   :  { %v1645_v39 = vpop.xlane.xlu1 %1644 }
 0xe70   :  { %v1647_v32 = vadd.f32 2.0, %v1645_v39  ;;  %v1642_v62 = vpop.xlane.xlu0 %1641 }
 0xe71   :  { %v1646_v33 = vadd.f32 2.0, %v1642_v62 }
 0xe72   :  { %2990 = vrsqrt.f32 %v1647_v32 }
 0xe73   :  { %2992 = vrsqrt.f32 %v1646_v33 }
 0xe7c   :  { %v2991_v37 = vpop.eup %2990 }
 0xe7d   :  { %v2993_v3 = vpop.eup %2992  ;;  %v1651_v42 = vmul.f32 %v2991_v37, %v2743_v9  ;;  %v1736_v63 = vmul.f32 2.0, %v2991_v37 }
 0xe7e   :  { %v1650_v44 = vmul.f32 %v2993_v3, %v1631_v15  ;;  %v1735_v5 = vmul.f32 2.0, %v2993_v3 }
 0xe7f   :  { %v1738_v6 = vmul.f32 %v2991_v37, %v1736_v63  ;;  %v1959_v63 = vld [vmem:[#allocation2 + $0xb0] sm:$0xff] }
 0xe80   :  { %v2900_v34 = vpack.c.bf16 %v1651_v42, %v1650_v44  ;;  %v1737_v41 = vmul.f32 %v2993_v3, %v1735_v5  ;;  %v1960_v5 = vld [vmem:[#allocation2 + $0xb8] sm:$0xff] }
 0xe81   :  { %v1740_v59 = vmul.f32 %v2743_v9, %v1738_v6  ;;  %v1936_v6 = vsub.s32 4, %v3140_v20 }
 0xe82   :  { %2901 = vmatprep.subr.bf16.mxu0 %v2900_v34  ;;  %v1739_v29 = vmul.f32 %v1737_v41, %v1631_v15 }
 0xe83   :  { %2903 = vmatpush3.bf16.msra.mxu0 %v2900_v34 }
 0xe84   :  { %2905 = vmatprep.subr.bf16.mxu0 %v2904_v19 }
 0xe86   :  { %2749 = vmatmul.mubr.msk.f32.vlgmr.msra.gmra.mrb[20].mxu0 %vm135_vm2, %v1553_v17 }
 0xe87   :  { %2907 = vmatpush3.bf16.msra.mxu0 %v2904_v19 }
 0xe88   :  { %2909 = vmatprep.subr.bf16.mxu0 %v2908_v55 }
 0xe8b   :  { %2911 = vmatpush3.bf16.msra.mxu0 %v2908_v55 }
 0xf59   :  { %v2750_v12 = vpop.f32.mrb[20].mxu0 }
 0xf5a   :  { %v1734_v16 = vmul.f32 %v2991_v37, %v2750_v12  ;;  %v1724_v53 = vpop.f32.mrb[21].mxu0 }
 0xf5b   :  { %v1733_v26 = vmul.f32 %v2993_v3, %v1724_v53 }
 0xf5c   :  { %v1742_v17 = vadd.f32 %v1740_v59, %v1734_v16  ;;  %v1937_v16 = vrot.slane %v3150_v24, %v1936_v6 }
 0xf5d   :  { %v1741_v30 = vadd.f32 %v1739_v29, %v1733_v26 }
 0xf5e   :  { %v1748_v31 = vadd.f32 %v1746_v23, %v1742_v17 }
 0xf5f   :  { %v1747_v35 = vadd.f32 %v1746_v23, %v1741_v30 }
 0xf60   :  { %v1750_v61 = vmul.f32 %v3430_v36, %v1748_v31 }
 0xf61   :  { %v1749_v39 = vmul.f32 %v3435_v56, %v1747_v35 }
 0xf62   :  { %v1754_v32 = vmin.f32 %v1750_v61, 0.0  ;;  %vm1752_vm6 = vcmp.gt.f32.partialorder %v1750_v61, 0.0 }
 0xf63   :  { %v1753_v62 = vmin.f32 %v1749_v39, 0.0  ;;  %vm1751_vm7 = vcmp.gt.f32.partialorder %v1749_v39, 0.0 }
 0xf64   :  { %v1757_v33 = vmul.f32 1.442695, %v1754_v32 }
 0xf65   :  { %v1755_v42 = vmul.f32 1.442695, %v1753_v62 }
 0xf66   :  { %2994 = vpow2.f32 %v1757_v33 }
 0xf67   :  { %2996 = vpow2.f32 %v1755_v42 }
 0xf70   :  { %v2995_v9 = vpop.eup %2994 }
 0xf71   :  { %v2997_v37 = vpop.eup %2996  ;;  %v2496_v44 = vadd.f32 -1.0, %v2995_v9 }
 0xf72   :  { %v2495_v3 = vadd.f32 -1.0, %v2997_v37 }
 0xf73   :  { %v1762_v15 = vsel %vm1752_vm6, %v1750_v61, %v2496_v44 }
 0xf74   :  { %v1761_v34 = vsel %vm1751_vm7, %v1749_v39, %v2495_v3  ;;  %v1764_v36 = vadd.f32 %v1762_v15, %v3403_v57  ;;  %v1957_v57 = vld [vmem:[#allocation2 + $0xa0] sm:$0xff] }
 0xf75   :  { %v1763_v45 = vadd.f32 %v1761_v34, %v3406_v1  ;;  %v1958_v1 = vld [vmem:[#allocation2 + $0xa8] sm:$0xff]  ;;  %v2150_v34 = vld [vmem:[#allocation2 + $0xd0] sm:$0xff] }
 0xf76   :  { %v2916_v55 = vpack.c.bf16 %v1958_v1, %v1957_v57 }
 0xf77   :  { %2759 = vmatprep.mubr.msk.f32.mxu0 %vm342_vm5, %v1763_v45  ;;  %v2151_v45 = vld [vmem:[#allocation2 + $0xd8] sm:$0xff] }
 0xf78   :  { %2760 = vmatmul.mubr.msk.f32.vlgmr.msra.gmra.mrb[22].mxu0 %vm342_vm5, %v1764_v36  ;;  %v2932_v36 = vpack.c.bf16 %v2151_v45, %v2150_v34 }
 0xf79   :  { %2784 = vmatprep.mubr.msk.f32.mxu0 %vm135_vm2, %v3251_v43  ;;  %v2920_v43 = vpack.c.bf16 %v1960_v5, %v1959_v63 }
0x104b   :  { %v2761_v56 = vpop.f32.mrb[22].mxu0 }
0x104c   :  { %v1852_v49 = vmul.f32 %v3366_v58, %v2761_v56  ;;  %v1842_v19 = vpop.f32.mrb[23].mxu0  ;;  %v1931_v41 = vmul.f32 %v2761_v56, %v3385_v10  ;;  %v2127_v56 = vsub.s32 5, %v3140_v20 }
0x104d   :  { %v1851_v50 = vmul.f32 %v3368_v60, %v1842_v19  ;;  %v1930_v59 = vmul.f32 %v1842_v19, %v3389_v14 }
0x104f   :  { %v2912_v51 = vpack.c.bf16 %v1852_v49, %v1851_v50 }
0x1051   :  { %2913 = vmatprep.subr.bf16.mxu1 %v2912_v51 }
0x1052   :  { %2915 = vmatpush3.bf16.msra.mxu1 %v2912_v51 }
0x1053   :  { %2917 = vmatprep.subr.bf16.mxu1 %v2916_v55 }
0x1055   :  { %2767 = vmatmul.mubr.msk.f32.vlgmr.msra.gmra.mrb[12].mxu1 %vm135_vm2, %v3356_v46 }
0x1056   :  { %2919 = vmatpush3.bf16.msra.mxu1 %v2916_v55 }
0x1057   :  { %2921 = vmatprep.subr.bf16.mxu1 %v2920_v43 }
0x105a   :  { %2923 = vmatpush3.bf16.msra.mxu1 %v2920_v43 }
0x1128   :  { %v2768_v7 = vpop.f32.mrb[12].mxu1 }
0x1129   :  { %v1929_v12 = vmul.f32 %v3366_v58, %v2768_v7  ;;  %v1919_v46 = vpop.f32.mrb[13].mxu1 }
0x112a   :  { %v1928_v23 = vmul.f32 %v3368_v60, %v1919_v46 }
0x112b   :  { %v1933_v53 = vadd.f32 %v1931_v41, %v1929_v12 }
0x112c   :  { %v1932_v26 = vadd.f32 %v1930_v59, %v1928_v23 }
0x112d   :  { %v1939_v29 = vadd.f32 %v1937_v16, %v1933_v53 }
0x112e   :  { %v1938_v17 = vadd.f32 %v1937_v16, %v1932_v26 }
0x112f   :  { %v1941_v30 = vmul.f32 %v3323_v18, %v1939_v29 }
0x1130   :  { %v1940_v31 = vmul.f32 %v3328_v28, %v1938_v17  ;;  %v3006_v28 = vld [vmem:[%s3547_s0] sm:$0xff] }
0x1131   :  { %v1945_v35 = vmin.f32 %v1941_v30, 0.0  ;;  %vm1943_vm8 = vcmp.gt.f32.partialorder %v1941_v30, 0.0 }
0x1132   :  { %v1944_v61 = vmin.f32 %v1940_v31, 0.0  ;;  %vm1942_vm12 = vcmp.gt.f32.partialorder %v1940_v31, 0.0 }
0x1133   :  { %v1948_v10 = vmul.f32 1.442695, %v1945_v35  ;;  %v3008_v35 = vld [vmem:[%s3547_s0 + $0x8] sm:$0xff]  ;;  %s3064_s0 = smov [#allocation5]  }
0x1134   :  { %v1946_v39 = vmul.f32 1.442695, %v1944_v61  ;;  %s2421_s21 = sshll.u32 %s3064_s0, 4  ;;  %s2422_s21 = int_to_ptr.vmem [resolvable:$true] %s2421_s21 }
0x1135   :  { %2998 = vpow2.f32 %v1948_v10  ;;  %v3062_v10 = vmov 0.0|0.0   ;;  %s3031_s22 = scalar_lea.vmem %s2422_s21, 16  ;;  %s3035_s23 = scalar_lea.vmem %s2422_s21, 32 }
0x1136   :  { %3000 = vpow2.f32 %v1946_v39  ;;  %v2335_v39 = vld [vmem:[#allocation2 + $0xf0] sm:$0xff]  ;;  %p3032_p8 = scmp.ne.s32.totalorder %s2422_s21, %s3031_s22  ;;  %p3036_p9 = scmp.lt.s32.totalorder %s2422_s21, %s2422_s21 }
0x1137   :  { %p3037_p10 = scmp.lt.s32.totalorder %s3035_s23, %s3031_s22 }
0x1139   :  { %p3038_p11 = por %p3037_p10, %p3036_p9 }
0x113b   :  { %p3039_p12 = pnand %p3038_p11, %p3032_p8 }
0x113f   :  { %v2999_v24 = vpop.eup %2998 }
0x1140   :  { %v3001_v58 = vpop.eup %3000  ;;  %v2502_v32 = vadd.f32 -1.0, %v2999_v24  ;;  %v2336_v24 = vld [vmem:[#allocation2 + $0xf8] sm:$0xff] }
0x1141   :  { %v2501_v14 = vadd.f32 -1.0, %v3001_v58  ;;  %v2944_v58 = vpack.c.bf16 %v2336_v24, %v2335_v39 }
0x1142   :  { %v1953_v60 = vsel %vm1943_vm8, %v1941_v30, %v2502_v32  ;;  %v2318_v32 = vsub.s32 6, %v3140_v20 }
0x1143   :  { %v1952_v62 = vsel %vm1942_vm12, %v1940_v31, %v2501_v14  ;;  %v1955_v18 = vadd.f32 %v1953_v60, %v3296_v38  ;;  %v2148_v38 = vld [vmem:[#allocation2 + $0xc0] sm:$0xff] }
0x1144   :  { %v1954_v33 = vadd.f32 %v1952_v62, %v3299_v4  ;;  %v2149_v4 = vld [vmem:[#allocation2 + $0xc8] sm:$0xff] }
0x1145   :  { %v2928_v15 = vpack.c.bf16 %v2149_v4, %v2148_v38 }
0x1146   :  { %2777 = vmatprep.mubr.msk.f32.mxu1 %vm342_vm5, %v1954_v33 }
0x1147   :  { %2778 = vmatmul.mubr.msk.f32.vlgmr.msra.gmra.mrb[14].mxu1 %vm342_vm5, %v1955_v18 }
0x1148   :  { %2802 = vmatprep.mubr.msk.f32.mxu1 %vm135_vm2, %v3006_v28 }
0x121a   :  { %v2779_v42 = vpop.f32.mrb[14].mxu1 }
0x121b   :  { %v2043_v9 = vmul.f32 %v3259_v52, %v2779_v42  ;;  %v2033_v37 = vpop.f32.mrb[15].mxu1  ;;  %v2122_v19 = vmul.f32 %v2779_v42, %v3278_v0 }
0x121c   :  { %v2042_v44 = vmul.f32 %v3261_v54, %v2033_v37  ;;  %v2121_v1 = vmul.f32 %v2033_v37, %v3282_v2 }
0x121e   :  { %v2924_v3 = vpack.c.bf16 %v2043_v9, %v2042_v44 }
0x1220   :  { %2925 = vmatprep.subr.bf16.mxu0 %v2924_v3 }
0x1221   :  { %2927 = vmatpush3.bf16.msra.mxu0 %v2924_v3 }
0x1222   :  { %2929 = vmatprep.subr.bf16.mxu0 %v2928_v15 }
0x1224   :  { %2785 = vmatmul.mubr.msk.f32.vlgmr.msra.gmra.mrb[24].mxu0 %vm135_vm2, %v3249_v40  ;;  %v3507_v40 = vld [vmem:[%s3550_s3] sm:$0xff] }
0x1225   :  { %2931 = vmatpush3.bf16.msra.mxu0 %v2928_v15  ;;  %v2128_v51 = vrot.slane %v3507_v40, %v2127_v56  ;;  %v2319_v33 = vrot.slane %v3507_v40, %v2318_v32 }
0x1226   :  { %2933 = vmatprep.subr.bf16.mxu0 %v2932_v36 }
0x1229   :  { %2935 = vmatpush3.bf16.msra.mxu0 %v2932_v36 }
0x12f7   :  { %v2786_v49 = vpop.f32.mrb[24].mxu0 }
0x12f8   :  { %v2120_v50 = vmul.f32 %v3259_v52, %v2786_v49  ;;  %v2110_v57 = vpop.f32.mrb[25].mxu0 }
0x12f9   :  { %v2119_v55 = vmul.f32 %v3261_v54, %v2110_v57 }
0x12fa   :  { %v2124_v63 = vadd.f32 %v2122_v19, %v2120_v50 }
0x12fb   :  { %v2123_v5 = vadd.f32 %v2121_v1, %v2119_v55 }
0x12fc   :  { %v2130_v43 = vadd.f32 %v2128_v51, %v2124_v63 }
0x12fd   :  { %v2129_v6 = vadd.f32 %v2128_v51, %v2123_v5 }
0x12fe   :  { %v2132_v0 = vmul.f32 %v3216_v21, %v2130_v43 }
0x12ff   :  { %v2131_v52 = vmul.f32 %v3221_v27, %v2129_v6 }
0x1300   :  { %v2136_v7 = vmin.f32 %v2132_v0, 0.0  ;;  %vm2134_vm15 = vcmp.gt.f32.partialorder %v2132_v0, 0.0 }
0x1301   :  { %v2135_v41 = vmin.f32 %v2131_v52, 0.0  ;;  %vm2133_vm0 = vcmp.gt.f32.partialorder %v2131_v52, 0.0 }
0x1302   :  { %v2139_v12 = vmul.f32 1.442695, %v2136_v7 }
0x1303   :  { %v2137_v16 = vmul.f32 1.442695, %v2135_v41 }
0x1304   :  { %3002 = vpow2.f32 %v2139_v12 }
0x1305   :  { %3004 = vpow2.f32 %v2137_v16 }
0x130e   :  { %v3003_v46 = vpop.eup %3002 }
0x130f   :  { %v3005_v59 = vpop.eup %3004  ;;  %v2508_v23 = vadd.f32 -1.0, %v3003_v46 }
0x1310   :  { %v2507_v2 = vadd.f32 -1.0, %v3005_v59 }
0x1311   :  { %v2144_v54 = vsel %vm2134_vm15, %v2132_v0, %v2508_v23 }
0x1312   :  { %v2143_v53 = vsel %vm2133_vm0, %v2131_v52, %v2507_v2  ;;  %v2146_v21 = vadd.f32 %v2144_v54, %v3168_v48  ;;  %v2334_v48 = vld [vmem:[#allocation2 + $0xe8] sm:$0xff] }
0x1313   :  { %v2145_v26 = vadd.f32 %v2143_v53, %v3166_v47  ;;  %v2333_v47 = vld [vmem:[#allocation2 + $0xe0] sm:$0xff] }
0x1314   :  { %v2941_v61 = vpack.c.bf16 %v2334_v48, %v2333_v47 }
0x1315   :  { %2795 = vmatprep.mubr.msk.f32.mxu0 %vm342_vm5, %v2145_v26 }
0x1316   :  { %2796 = vmatmul.mubr.msk.f32.vlgmr.msra.gmra.mrb[26].mxu0 %vm342_vm5, %v2146_v21 }
0x13e9   :  { %v2797_v27 = vpop.f32.mrb[26].mxu0 }
0x13ea   :  { %v2234_v29 = vmul.f32 %v3129_v11, %v2797_v27  ;;  %v2224_v17 = vpop.f32.mrb[27].mxu0  ;;  %v2313_v60 = vmul.f32 %v2797_v27, %v3144_v22 }
0x13eb   :  { %v2233_v30 = vmul.f32 %v3131_v13, %v2224_v17  ;;  %v2312_v28 = vmul.f32 %v2224_v17, %v3153_v25 }
0x13ed   :  { %v2936_v31 = vpack.c.bf16 %v2234_v29, %v2233_v30 }
0x13ef   :  { %2937 = vmatprep.subr.bf16.mxu1 %v2936_v31 }
0x13f0   :  { %2939 = vmatpush3.bf16.msra.mxu1 %v2936_v31 }
0x13f1   :  { %2940 = vmatprep.subr.bf16.mxu1 %v3062_v10 }
0x13f3   :  { %2803 = vmatmul.mubr.msk.f32.vlgmr.msra.gmra.mrb[16].mxu1 %vm135_vm2, %v3008_v35  ;;  %vm2413_vm2 = vcmask 253952  }
0x13f4   :  { %2942 = vmatpush3.bf16.msra.mxu1 %v2941_v61  ;;  %2813 = vmatprep.mubr.msk.f32.mxu1 %vm3063_vm3, %v3061_v8 }
0x13f5   :  { %2943 = vmatprep.subr.bf16.mxu1 %v3062_v10 }
0x13f8   :  { %2945 = vmatpush3.bf16.msra.mxu1 %v2944_v58 }
0x14c6   :  { %v2804_v14 = vpop.f32.mrb[16].mxu1 }
0x14c7   :  { %v2311_v62 = vmul.f32 %v3129_v11, %v2804_v14  ;;  %v2301_v18 = vpop.f32.mrb[17].mxu1 }
0x14c8   :  { %v2310_v42 = vmul.f32 %v3131_v13, %v2301_v18  ;;  %v2338_v13 = vrot.slane %v3507_v40, 7 }
0x14c9   :  { %v2315_v9 = vadd.f32 %v2313_v60, %v2311_v62 }
0x14ca   :  { %v2314_v37 = vadd.f32 %v2312_v28, %v2310_v42 }
0x14cb   :  { %v2321_v44 = vadd.f32 %v2319_v33, %v2315_v9 }
0x14cc   :  { %v2320_v3 = vadd.f32 %v2319_v33, %v2314_v37 }
0x14cd   :  { %v2323_v8 = vsel %vm342_vm5, %v2321_v44, 0.0 }
0x14ce   :  { %v2322_v20 = vsel %vm342_vm5, %v2320_v3, 0.0 }
0x14cf   :  { %v2324_v38 = vadd.f32 %v2323_v8, %v2322_v20 }
0x14d1   :  { %v2325_v4 = vrot.slane %v2324_v38, 4 }
0x14d3   :  { %v2326_v22 = vadd.f32 %v2325_v4, %v2324_v38 }
0x14d5   :  { %v2327_v15 = vrot.slane %v2326_v22, 2 }
0x14d7   :  { %v2328_v11 = vadd.f32 %v2327_v15, %v2326_v22 }
0x14d9   :  { %v2329_v34 = vrot.slane %v2328_v11, 1 }
0x14db   :  { %v2330_v45 = vadd.f32 %v2329_v34, %v2328_v11 }
0x14dd   :  { %v2331_v36 = vmul.f32 0.0625, %v2330_v45 }
0x14df   :  { %2814 = vmatmul.mubr.msk.f32.vlgmr.msra.gmra.mrb[18].mxu1 %vm342_vm5, %v2331_v36 }
0x15b2   :  { %v2409_v25 = vpop.f32.mrb[18].mxu1 }
0x15b3   :  { %v2410_v56 = vadd.f32 %v2409_v25, %v2338_v13  ;;  %v2815_v49 = vpop.f32.mrb[19].mxu1 }
0x15b5   :  { %2414 = vst.msk [vmem:[#allocation5] sm:$0x1] %vm2413_vm2, %v2410_v56 }
0x15b6   :  { %3042 = shalt.err (!%p3039_p12)
}
0x15b7   :  { %s3043_s26 = scalar_lea.hbm %s3552_s5, 16 }
0x15b8   :  { %p3044_p13 = scmp.ne.s32.totalorder %s3552_s5, %s3043_s26  ;;  %p3047_p0 = scmp.lt.u32.totalorder %s3043_s26, %s3552_s5 }
0x15ba   :  { %p3049_p1 = pnand %p3047_p0, %p3044_p13 }
0x15bc   :  { %3052 = shalt.err (!%p3049_p1)
}
0x15bd   :  { %2424 = dma.vmem_to_hbm [thread:$0]  %s2422_s21, 16, %s3552_s5, [#allocation4]  }
0x15be   :  { %3055 = dma.done.wait [#allocation4], 16  }
0x15bf   :  { %3056 = vsyncadd [#allocation4], 4294967280 }
0x15c0   :  { %2428 = vsyncpa [#allocation3], 1 }
0x15c1   :  { %2429 = vsyncpa [#allocation4], 1 }

</bundles_post_ra>
